<compile_context>
chip_gen: v6e
topology: v6e:2x2x1
jax: 0.10.0
libtpu: 0.0.40
codegen_flags: <defaults>
</compile_context>

<pallas_src>
import functools

import jax
import jax.numpy as jnp
from jax.experimental import pallas as pl
from jax.experimental.pallas import tpu as pltpu


# ----------------------------------------------------------------------------
# Model configuration (mirrors AutoEncoder.__init__ with NONLINEAR = True)
# ----------------------------------------------------------------------------
def layer_dims(num_question: int, k: int):
    """(in, out) dims of the 19 linear layers, in forward-pass order."""
    return [
        (num_question, k),   # g
        (k, 100),            # aa
        (100, 80),           # ab
        (80, 40),            # ac
        (40, 20),            # ad
        (20, 5),             # ae
        (5, 10),             # ag
        (10, 20),            # ah
        (20, 40),            # ai
        (40, 80),            # aj
        (80, 100),           # ak
        (100, k),            # al
        (k, k),              # ar
        (k, k),              # as_
        (k, k),              # at
        (k, k),              # au
        (k, k),              # av
        (k, k),              # aw
        (k, num_question),   # h
    ]


# Number of extra `x = sigmoid(relu(x))` ops applied AFTER the linear layer at
# the given (0-based) position in the list above.
#   after ae (idx 5): af                    -> 1
#   after al (idx 11): am, an, ao, ap, aq   -> 5
RELU_SIGMOID_AFTER = {5: 1, 11: 5}


# ----------------------------------------------------------------------------
# Pallas kernel
# ----------------------------------------------------------------------------
def _sigmoid_fast(y):
    # sigmoid via EUP exp + approx reciprocal (keeps the divide off the VALU).
    return pl.reciprocal(1.0 + jnp.exp(-y), approx=True)


def autoencoder_kernel(n_layers, relu_sig_after, x_ref, w_ref, b_ref, out_ref):
    """x_ref: (Bblk, P) f32.  w_ref: (L, P, P) bf16.  b_ref: (L, 1, P) f32."""
    x = x_ref[...]                                   # f32 activations
    for i in range(n_layers):                        # static Python unroll
        w = w_ref[i]                                 # (P, P) bf16, static index
        b = b_ref[i]                                 # (1, P) f32
        y = jnp.dot(x.astype(jnp.bfloat16), w,
                    preferred_element_type=jnp.float32) + b
        x = _sigmoid_fast(y)
        # torch does x = sigmoid(relu(x)); relu is a no-op on a sigmoid output
        # (always > 0), so only the extra sigmoid(s) remain.
        for _ in range(relu_sig_after.get(i, 0)):
            x = _sigmoid_fast(x)
    out_ref[...] = x.astype(out_ref.dtype)


# ----------------------------------------------------------------------------
# Wrapper
# ----------------------------------------------------------------------------
def autoencoder_forward(x, weights, biases, *, max_block_b=256):
    """x: (B, num_question) f32.  weights[i]: (in_i, out_i) (= torch W.T).
    biases[i]: (out_i,)."""
    n_layers = len(weights)
    batch, num_question = x.shape

    # Padded feature width: every activation / matmul is P lanes wide.
    max_dim = max(max(w.shape) for w in weights)
    max_dim = max(max_dim, num_question)
    P = ((max_dim + 127) // 128) * 128

    # Stack & zero-pad params.  Padded weight rows / bias lanes are exactly 0,
    # so the sigmoid(0)=0.5 values in padded activation lanes never contribute.
    w_stack = jnp.stack([
        jnp.zeros((P, P), jnp.float32).at[:w.shape[0], :w.shape[1]].set(w)
        for w in weights
    ]).astype(jnp.bfloat16)                                  # (L, P, P) bf16
    b_stack = jnp.stack([
        jnp.zeros((1, P), jnp.float32).at[0, :b.shape[-1]].set(b.reshape(-1))
        for b in biases
    ])                                                        # (L, 1, P) f32

    # Batch tiling: up to max_block_b rows per grid step, padded with zero rows.
    b_aligned = ((batch + 7) // 8) * 8
    block_b = min(max_block_b, b_aligned)
    b_padded = ((b_aligned + block_b - 1) // block_b) * block_b
    x_pad = jnp.zeros((b_padded, P), jnp.float32).at[:batch, :num_question].set(x)

    grid = (b_padded // block_b,)
    out = pl.pallas_call(
        functools.partial(autoencoder_kernel, n_layers, RELU_SIGMOID_AFTER),
        out_shape=jax.ShapeDtypeStruct((b_padded, P), jnp.float32),
        grid=grid,
        in_specs=[
            pl.BlockSpec((block_b, P), lambda i: (i, 0)),          # activations
            pl.BlockSpec((n_layers, P, P), lambda i: (0, 0, 0)),   # weights (resident)
            pl.BlockSpec((n_layers, 1, P), lambda i: (0, 0, 0)),   # biases (resident)
        ],
        out_specs=pl.BlockSpec((block_b, P), lambda i: (i, 0)),
        compiler_params=pltpu.CompilerParams(
            dimension_semantics=("parallel",)),
    )(x_pad, w_stack, b_stack)

    return out[:batch, :num_question]


# ----------------------------------------------------------------------------
# Pure-JAX reference (f32, exact sigmoid — matches the torch forward)
# ----------------------------------------------------------------------------
def reference_forward(x, weights, biases):
    h = x
    for i, (w, b) in enumerate(zip(weights, biases)):
        h = jax.nn.sigmoid(h @ w + b[None, :])
        for _ in range(RELU_SIGMOID_AFTER.get(i, 0)):
            h = jax.nn.sigmoid(jnp.maximum(h, 0.0))   # kept for torch parity
    return h


# ----------------------------------------------------------------------------
# Main
# ----------------------------------------------------------------------------
if __name__ == "__main__":
    num_question = 128
    k = 100
    batch = 8

    key = jax.random.PRNGKey(0)
    dims = layer_dims(num_question, k)

    weights, biases = [], []
    for (fan_in, fan_out) in dims:
        key, kw, kb = jax.random.split(key, 3)
        bound = 1.0 / jnp.sqrt(fan_in)
        # Mimics nn.Linear's U(-1/sqrt(in), 1/sqrt(in)); stored as (in, out) = torch W.T
        w = jax.random.uniform(kw, (fan_in, fan_out), jnp.float32, -bound, bound)
        b = jax.random.uniform(kb, (fan_out,), jnp.float32, -bound, bound)
        weights.append(w)
        biases.append(b)

    key, kx = jax.random.split(key)
    x = jax.random.uniform(kx, (batch, num_question), jnp.float32)

    out = autoencoder_forward(x, weights, biases)
    out = jax.block_until_ready(out)

    ref = reference_forward(x, weights, biases)
    assert out.shape == (batch, num_question)
    # bf16 matmuls + approx-reciprocal sigmoid vs f32 reference: output is
    # sigmoid-bounded, error stays ~1e-3; 1e-2 tolerance is comfortable.
    assert jnp.allclose(out, ref, atol=1e-2, rtol=0.0), "mismatch vs JAX reference"

    print("KERNEL_OK")
</pallas_src>

<mosaic_0001>
module attributes {stable_mosaic.version = 11 : i64} {
  func.func @autoencoder_kernel(%arg0: i32, %arg1: memref<8x128xf32, #tpu.memory_space<vmem>>, %arg2: memref<19x128x128xbf16, #tpu.memory_space<vmem>>, %arg3: memref<19x1x128xf32, #tpu.memory_space<vmem>>, %arg4: memref<8x128xf32, #tpu.memory_space<vmem>>) attributes {dimension_semantics = [#tpu.dimension_semantics<parallel>], iteration_bounds = array<i64: 1>, scalar_prefetch = 0 : i64, scratch_operands = 0 : i64, tpu.core_type = #tpu.core_type<tc>, window_params = [{transform_indices = @transform_0, window_bounds = array<i64: 8, 128>}, {pipeline_mode = #tpu.pipeline_mode<synchronous>, transform_indices = @transform_1, window_bounds = array<i64: 19, 128, 128>}, {pipeline_mode = #tpu.pipeline_mode<synchronous>, transform_indices = @transform_2, window_bounds = array<i64: 19, 1, 128>}, {transform_indices = @transform_3, window_bounds = array<i64: 8, 128>}]} {
    %c0 = arith.constant 0 : index
    %c0_0 = arith.constant 0 : index
    %0 = vector.load %arg1[%c0, %c0_0] : memref<8x128xf32, #tpu.memory_space<vmem>>, vector<8x128xf32>
    %c0_1 = arith.constant 0 : index
    %c0_2 = arith.constant 0 : index
    %c0_3 = arith.constant 0 : index
    %1 = vector.load %arg2[%c0_1, %c0_2, %c0_3] : memref<19x128x128xbf16, #tpu.memory_space<vmem>>, vector<1x128x128xbf16>
    %2 = vector.shape_cast %1 : vector<1x128x128xbf16> to vector<128x128xbf16>
    %c0_4 = arith.constant 0 : index
    %c0_5 = arith.constant 0 : index
    %c0_6 = arith.constant 0 : index
    %3 = vector.load %arg3[%c0_4, %c0_5, %c0_6] : memref<19x1x128xf32, #tpu.memory_space<vmem>>, vector<1x1x128xf32>
    %4 = vector.shape_cast %3 : vector<1x1x128xf32> to vector<1x128xf32>
    %5 = arith.truncf %0 : vector<8x128xf32> to vector<8x128xbf16>
    %cst = arith.constant dense<0.000000e+00> : vector<8x128xf32>
    %6 = tpu.matmul %5, %2, %cst {dimension_numbers = #tpu.dot_dimension_numbers<[1], [0], [0], [1], [0, 0, 1, 1], [], []>} : vector<8x128xbf16>, vector<128x128xbf16>, vector<8x128xf32> -> vector<8x128xf32>
    %7 = vector.broadcast %4 : vector<1x128xf32> to vector<8x128xf32>
    %8 = arith.addf %6, %7 : vector<8x128xf32>
    %cst_7 = arith.constant 0.000000e+00 : f32
    %9 = vector.broadcast %cst_7 : f32 to vector<8x128xf32>
    %10 = arith.subf %9, %8 : vector<8x128xf32>
    %11 = math.exp %10 : vector<8x128xf32>
    %cst_8 = arith.constant 1.000000e+00 : f32
    %12 = vector.broadcast %cst_8 : f32 to vector<8x128xf32>
    %13 = arith.addf %12, %11 : vector<8x128xf32>
    %14 = tpu.reciprocal %13 {approx = true} : vector<8x128xf32> -> vector<8x128xf32>
    %c1 = arith.constant 1 : index
    %c0_9 = arith.constant 0 : index
    %c0_10 = arith.constant 0 : index
    %15 = vector.load %arg2[%c1, %c0_9, %c0_10] : memref<19x128x128xbf16, #tpu.memory_space<vmem>>, vector<1x128x128xbf16>
    %16 = vector.shape_cast %15 : vector<1x128x128xbf16> to vector<128x128xbf16>
    %c1_11 = arith.constant 1 : index
    %c0_12 = arith.constant 0 : index
    %c0_13 = arith.constant 0 : index
    %17 = vector.load %arg3[%c1_11, %c0_12, %c0_13] : memref<19x1x128xf32, #tpu.memory_space<vmem>>, vector<1x1x128xf32>
    %18 = vector.shape_cast %17 : vector<1x1x128xf32> to vector<1x128xf32>
    %19 = arith.truncf %14 : vector<8x128xf32> to vector<8x128xbf16>
    %cst_14 = arith.constant dense<0.000000e+00> : vector<8x128xf32>
    %20 = tpu.matmul %19, %16, %cst_14 {dimension_numbers = #tpu.dot_dimension_numbers<[1], [0], [0], [1], [0, 0, 1, 1], [], []>} : vector<8x128xbf16>, vector<128x128xbf16>, vector<8x128xf32> -> vector<8x128xf32>
    %21 = vector.broadcast %18 : vector<1x128xf32> to vector<8x128xf32>
    %22 = arith.addf %20, %21 : vector<8x128xf32>
    %cst_15 = arith.constant 0.000000e+00 : f32
    %23 = vector.broadcast %cst_15 : f32 to vector<8x128xf32>
    %24 = arith.subf %23, %22 : vector<8x128xf32>
    %25 = math.exp %24 : vector<8x128xf32>
    %cst_16 = arith.constant 1.000000e+00 : f32
    %26 = vector.broadcast %cst_16 : f32 to vector<8x128xf32>
    %27 = arith.addf %26, %25 : vector<8x128xf32>
    %28 = tpu.reciprocal %27 {approx = true} : vector<8x128xf32> -> vector<8x128xf32>
    %c2 = arith.constant 2 : index
    %c0_17 = arith.constant 0 : index
    %c0_18 = arith.constant 0 : index
    %29 = vector.load %arg2[%c2, %c0_17, %c0_18] : memref<19x128x128xbf16, #tpu.memory_space<vmem>>, vector<1x128x128xbf16>
    %30 = vector.shape_cast %29 : vector<1x128x128xbf16> to vector<128x128xbf16>
    %c2_19 = arith.constant 2 : index
    %c0_20 = arith.constant 0 : index
    %c0_21 = arith.constant 0 : index
    %31 = vector.load %arg3[%c2_19, %c0_20, %c0_21] : memref<19x1x128xf32, #tpu.memory_space<vmem>>, vector<1x1x128xf32>
    %32 = vector.shape_cast %31 : vector<1x1x128xf32> to vector<1x128xf32>
    %33 = arith.truncf %28 : vector<8x128xf32> to vector<8x128xbf16>
    %cst_22 = arith.constant dense<0.000000e+00> : vector<8x128xf32>
    %34 = tpu.matmul %33, %30, %cst_22 {dimension_numbers = #tpu.dot_dimension_numbers<[1], [0], [0], [1], [0, 0, 1, 1], [], []>} : vector<8x128xbf16>, vector<128x128xbf16>, vector<8x128xf32> -> vector<8x128xf32>
    %35 = vector.broadcast %32 : vector<1x128xf32> to vector<8x128xf32>
    %36 = arith.addf %34, %35 : vector<8x128xf32>
    %cst_23 = arith.constant 0.000000e+00 : f32
    %37 = vector.broadcast %cst_23 : f32 to vector<8x128xf32>
    %38 = arith.subf %37, %36 : vector<8x128xf32>
    %39 = math.exp %38 : vector<8x128xf32>
    %cst_24 = arith.constant 1.000000e+00 : f32
    %40 = vector.broadcast %cst_24 : f32 to vector<8x128xf32>
    %41 = arith.addf %40, %39 : vector<8x128xf32>
    %42 = tpu.reciprocal %41 {approx = true} : vector<8x128xf32> -> vector<8x128xf32>
    %c3 = arith.constant 3 : index
    %c0_25 = arith.constant 0 : index
    %c0_26 = arith.constant 0 : index
    %43 = vector.load %arg2[%c3, %c0_25, %c0_26] : memref<19x128x128xbf16, #tpu.memory_space<vmem>>, vector<1x128x128xbf16>
    %44 = vector.shape_cast %43 : vector<1x128x128xbf16> to vector<128x128xbf16>
    %c3_27 = arith.constant 3 : index
    %c0_28 = arith.constant 0 : index
    %c0_29 = arith.constant 0 : index
    %45 = vector.load %arg3[%c3_27, %c0_28, %c0_29] : memref<19x1x128xf32, #tpu.memory_space<vmem>>, vector<1x1x128xf32>
    %46 = vector.shape_cast %45 : vector<1x1x128xf32> to vector<1x128xf32>
    %47 = arith.truncf %42 : vector<8x128xf32> to vector<8x128xbf16>
    %cst_30 = arith.constant dense<0.000000e+00> : vector<8x128xf32>
    %48 = tpu.matmul %47, %44, %cst_30 {dimension_numbers = #tpu.dot_dimension_numbers<[1], [0], [0], [1], [0, 0, 1, 1], [], []>} : vector<8x128xbf16>, vector<128x128xbf16>, vector<8x128xf32> -> vector<8x128xf32>
    %49 = vector.broadcast %46 : vector<1x128xf32> to vector<8x128xf32>
    %50 = arith.addf %48, %49 : vector<8x128xf32>
    %cst_31 = arith.constant 0.000000e+00 : f32
    %51 = vector.broadcast %cst_31 : f32 to vector<8x128xf32>
    %52 = arith.subf %51, %50 : vector<8x128xf32>
    %53 = math.exp %52 : vector<8x128xf32>
    %cst_32 = arith.constant 1.000000e+00 : f32
    %54 = vector.broadcast %cst_32 : f32 to vector<8x128xf32>
    %55 = arith.addf %54, %53 : vector<8x128xf32>
    %56 = tpu.reciprocal %55 {approx = true} : vector<8x128xf32> -> vector<8x128xf32>
    %c4 = arith.constant 4 : index
    %c0_33 = arith.constant 0 : index
    %c0_34 = arith.constant 0 : index
    %57 = vector.load %arg2[%c4, %c0_33, %c0_34] : memref<19x128x128xbf16, #tpu.memory_space<vmem>>, vector<1x128x128xbf16>
    %58 = vector.shape_cast %57 : vector<1x128x128xbf16> to vector<128x128xbf16>
    %c4_35 = arith.constant 4 : index
    %c0_36 = arith.constant 0 : index
    %c0_37 = arith.constant 0 : index
    %59 = vector.load %arg3[%c4_35, %c0_36, %c0_37] : memref<19x1x128xf32, #tpu.memory_space<vmem>>, vector<1x1x128xf32>
    %60 = vector.shape_cast %59 : vector<1x1x128xf32> to vector<1x128xf32>
    %61 = arith.truncf %56 : vector<8x128xf32> to vector<8x128xbf16>
    %cst_38 = arith.constant dense<0.000000e+00> : vector<8x128xf32>
    %62 = tpu.matmul %61, %58, %cst_38 {dimension_numbers = #tpu.dot_dimension_numbers<[1], [0], [0], [1], [0, 0, 1, 1], [], []>} : vector<8x128xbf16>, vector<128x128xbf16>, vector<8x128xf32> -> vector<8x128xf32>
    %63 = vector.broadcast %60 : vector<1x128xf32> to vector<8x128xf32>
    %64 = arith.addf %62, %63 : vector<8x128xf32>
    %cst_39 = arith.constant 0.000000e+00 : f32
    %65 = vector.broadcast %cst_39 : f32 to vector<8x128xf32>
    %66 = arith.subf %65, %64 : vector<8x128xf32>
    %67 = math.exp %66 : vector<8x128xf32>
    %cst_40 = arith.constant 1.000000e+00 : f32
    %68 = vector.broadcast %cst_40 : f32 to vector<8x128xf32>
    %69 = arith.addf %68, %67 : vector<8x128xf32>
    %70 = tpu.reciprocal %69 {approx = true} : vector<8x128xf32> -> vector<8x128xf32>
    %c5 = arith.constant 5 : index
    %c0_41 = arith.constant 0 : index
    %c0_42 = arith.constant 0 : index
    %71 = vector.load %arg2[%c5, %c0_41, %c0_42] : memref<19x128x128xbf16, #tpu.memory_space<vmem>>, vector<1x128x128xbf16>
    %72 = vector.shape_cast %71 : vector<1x128x128xbf16> to vector<128x128xbf16>
    %c5_43 = arith.constant 5 : index
    %c0_44 = arith.constant 0 : index
    %c0_45 = arith.constant 0 : index
    %73 = vector.load %arg3[%c5_43, %c0_44, %c0_45] : memref<19x1x128xf32, #tpu.memory_space<vmem>>, vector<1x1x128xf32>
    %74 = vector.shape_cast %73 : vector<1x1x128xf32> to vector<1x128xf32>
    %75 = arith.truncf %70 : vector<8x128xf32> to vector<8x128xbf16>
    %cst_46 = arith.constant dense<0.000000e+00> : vector<8x128xf32>
    %76 = tpu.matmul %75, %72, %cst_46 {dimension_numbers = #tpu.dot_dimension_numbers<[1], [0], [0], [1], [0, 0, 1, 1], [], []>} : vector<8x128xbf16>, vector<128x128xbf16>, vector<8x128xf32> -> vector<8x128xf32>
    %77 = vector.broadcast %74 : vector<1x128xf32> to vector<8x128xf32>
    %78 = arith.addf %76, %77 : vector<8x128xf32>
    %cst_47 = arith.constant 0.000000e+00 : f32
    %79 = vector.broadcast %cst_47 : f32 to vector<8x128xf32>
    %80 = arith.subf %79, %78 : vector<8x128xf32>
    %81 = math.exp %80 : vector<8x128xf32>
    %cst_48 = arith.constant 1.000000e+00 : f32
    %82 = vector.broadcast %cst_48 : f32 to vector<8x128xf32>
    %83 = arith.addf %82, %81 : vector<8x128xf32>
    %84 = tpu.reciprocal %83 {approx = true} : vector<8x128xf32> -> vector<8x128xf32>
    %cst_49 = arith.constant 0.000000e+00 : f32
    %85 = vector.broadcast %cst_49 : f32 to vector<8x128xf32>
    %86 = arith.subf %85, %84 : vector<8x128xf32>
    %87 = math.exp %86 : vector<8x128xf32>
    %cst_50 = arith.constant 1.000000e+00 : f32
    %88 = vector.broadcast %cst_50 : f32 to vector<8x128xf32>
    %89 = arith.addf %88, %87 : vector<8x128xf32>
    %90 = tpu.reciprocal %89 {approx = true} : vector<8x128xf32> -> vector<8x128xf32>
    %c6 = arith.constant 6 : index
    %c0_51 = arith.constant 0 : index
    %c0_52 = arith.constant 0 : index
    %91 = vector.load %arg2[%c6, %c0_51, %c0_52] : memref<19x128x128xbf16, #tpu.memory_space<vmem>>, vector<1x128x128xbf16>
    %92 = vector.shape_cast %91 : vector<1x128x128xbf16> to vector<128x128xbf16>
    %c6_53 = arith.constant 6 : index
    %c0_54 = arith.constant 0 : index
    %c0_55 = arith.constant 0 : index
    %93 = vector.load %arg3[%c6_53, %c0_54, %c0_55] : memref<19x1x128xf32, #tpu.memory_space<vmem>>, vector<1x1x128xf32>
    %94 = vector.shape_cast %93 : vector<1x1x128xf32> to vector<1x128xf32>
    %95 = arith.truncf %90 : vector<8x128xf32> to vector<8x128xbf16>
    %cst_56 = arith.constant dense<0.000000e+00> : vector<8x128xf32>
    %96 = tpu.matmul %95, %92, %cst_56 {dimension_numbers = #tpu.dot_dimension_numbers<[1], [0], [0], [1], [0, 0, 1, 1], [], []>} : vector<8x128xbf16>, vector<128x128xbf16>, vector<8x128xf32> -> vector<8x128xf32>
    %97 = vector.broadcast %94 : vector<1x128xf32> to vector<8x128xf32>
    %98 = arith.addf %96, %97 : vector<8x128xf32>
    %cst_57 = arith.constant 0.000000e+00 : f32
    %99 = vector.broadcast %cst_57 : f32 to vector<8x128xf32>
    %100 = arith.subf %99, %98 : vector<8x128xf32>
    %101 = math.exp %100 : vector<8x128xf32>
    %cst_58 = arith.constant 1.000000e+00 : f32
    %102 = vector.broadcast %cst_58 : f32 to vector<8x128xf32>
    %103 = arith.addf %102, %101 : vector<8x128xf32>
    %104 = tpu.reciprocal %103 {approx = true} : vector<8x128xf32> -> vector<8x128xf32>
    %c7 = arith.constant 7 : index
    %c0_59 = arith.constant 0 : index
    %c0_60 = arith.constant 0 : index
    %105 = vector.load %arg2[%c7, %c0_59, %c0_60] : memref<19x128x128xbf16, #tpu.memory_space<vmem>>, vector<1x128x128xbf16>
    %106 = vector.shape_cast %105 : vector<1x128x128xbf16> to vector<128x128xbf16>
    %c7_61 = arith.constant 7 : index
    %c0_62 = arith.constant 0 : index
    %c0_63 = arith.constant 0 : index
    %107 = vector.load %arg3[%c7_61, %c0_62, %c0_63] : memref<19x1x128xf32, #tpu.memory_space<vmem>>, vector<1x1x128xf32>
    %108 = vector.shape_cast %107 : vector<1x1x128xf32> to vector<1x128xf32>
    %109 = arith.truncf %104 : vector<8x128xf32> to vector<8x128xbf16>
    %cst_64 = arith.constant dense<0.000000e+00> : vector<8x128xf32>
    %110 = tpu.matmul %109, %106, %cst_64 {dimension_numbers = #tpu.dot_dimension_numbers<[1], [0], [0], [1], [0, 0, 1, 1], [], []>} : vector<8x128xbf16>, vector<128x128xbf16>, vector<8x128xf32> -> vector<8x128xf32>
    %111 = vector.broadcast %108 : vector<1x128xf32> to vector<8x128xf32>
    %112 = arith.addf %110, %111 : vector<8x128xf32>
    %cst_65 = arith.constant 0.000000e+00 : f32
    %113 = vector.broadcast %cst_65 : f32 to vector<8x128xf32>
    %114 = arith.subf %113, %112 : vector<8x128xf32>
    %115 = math.exp %114 : vector<8x128xf32>
    %cst_66 = arith.constant 1.000000e+00 : f32
    %116 = vector.broadcast %cst_66 : f32 to vector<8x128xf32>
    %117 = arith.addf %116, %115 : vector<8x128xf32>
    %118 = tpu.reciprocal %117 {approx = true} : vector<8x128xf32> -> vector<8x128xf32>
    %c8 = arith.constant 8 : index
    %c0_67 = arith.constant 0 : index
    %c0_68 = arith.constant 0 : index
    %119 = vector.load %arg2[%c8, %c0_67, %c0_68] : memref<19x128x128xbf16, #tpu.memory_space<vmem>>, vector<1x128x128xbf16>
    %120 = vector.shape_cast %119 : vector<1x128x128xbf16> to vector<128x128xbf16>
    %c8_69 = arith.constant 8 : index
    %c0_70 = arith.constant 0 : index
    %c0_71 = arith.constant 0 : index
    %121 = vector.load %arg3[%c8_69, %c0_70, %c0_71] : memref<19x1x128xf32, #tpu.memory_space<vmem>>, vector<1x1x128xf32>
    %122 = vector.shape_cast %121 : vector<1x1x128xf32> to vector<1x128xf32>
    %123 = arith.truncf %118 : vector<8x128xf32> to vector<8x128xbf16>
    %cst_72 = arith.constant dense<0.000000e+00> : vector<8x128xf32>
    %124 = tpu.matmul %123, %120, %cst_72 {dimension_numbers = #tpu.dot_dimension_numbers<[1], [0], [0], [1], [0, 0, 1, 1], [], []>} : vector<8x128xbf16>, vector<128x128xbf16>, vector<8x128xf32> -> vector<8x128xf32>
    %125 = vector.broadcast %122 : vector<1x128xf32> to vector<8x128xf32>
    %126 = arith.addf %124, %125 : vector<8x128xf32>
    %cst_73 = arith.constant 0.000000e+00 : f32
    %127 = vector.broadcast %cst_73 : f32 to vector<8x128xf32>
    %128 = arith.subf %127, %126 : vector<8x128xf32>
    %129 = math.exp %128 : vector<8x128xf32>
    %cst_74 = arith.constant 1.000000e+00 : f32
    %130 = vector.broadcast %cst_74 : f32 to vector<8x128xf32>
    %131 = arith.addf %130, %129 : vector<8x128xf32>
    %132 = tpu.reciprocal %131 {approx = true} : vector<8x128xf32> -> vector<8x128xf32>
    %c9 = arith.constant 9 : index
    %c0_75 = arith.constant 0 : index
    %c0_76 = arith.constant 0 : index
    %133 = vector.load %arg2[%c9, %c0_75, %c0_76] : memref<19x128x128xbf16, #tpu.memory_space<vmem>>, vector<1x128x128xbf16>
    %134 = vector.shape_cast %133 : vector<1x128x128xbf16> to vector<128x128xbf16>
    %c9_77 = arith.constant 9 : index
    %c0_78 = arith.constant 0 : index
    %c0_79 = arith.constant 0 : index
    %135 = vector.load %arg3[%c9_77, %c0_78, %c0_79] : memref<19x1x128xf32, #tpu.memory_space<vmem>>, vector<1x1x128xf32>
    %136 = vector.shape_cast %135 : vector<1x1x128xf32> to vector<1x128xf32>
    %137 = arith.truncf %132 : vector<8x128xf32> to vector<8x128xbf16>
    %cst_80 = arith.constant dense<0.000000e+00> : vector<8x128xf32>
    %138 = tpu.matmul %137, %134, %cst_80 {dimension_numbers = #tpu.dot_dimension_numbers<[1], [0], [0], [1], [0, 0, 1, 1], [], []>} : vector<8x128xbf16>, vector<128x128xbf16>, vector<8x128xf32> -> vector<8x128xf32>
    %139 = vector.broadcast %136 : vector<1x128xf32> to vector<8x128xf32>
    %140 = arith.addf %138, %139 : vector<8x128xf32>
    %cst_81 = arith.constant 0.000000e+00 : f32
    %141 = vector.broadcast %cst_81 : f32 to vector<8x128xf32>
    %142 = arith.subf %141, %140 : vector<8x128xf32>
    %143 = math.exp %142 : vector<8x128xf32>
    %cst_82 = arith.constant 1.000000e+00 : f32
    %144 = vector.broadcast %cst_82 : f32 to vector<8x128xf32>
    %145 = arith.addf %144, %143 : vector<8x128xf32>
    %146 = tpu.reciprocal %145 {approx = true} : vector<8x128xf32> -> vector<8x128xf32>
    %c10 = arith.constant 10 : index
    %c0_83 = arith.constant 0 : index
    %c0_84 = arith.constant 0 : index
    %147 = vector.load %arg2[%c10, %c0_83, %c0_84] : memref<19x128x128xbf16, #tpu.memory_space<vmem>>, vector<1x128x128xbf16>
    %148 = vector.shape_cast %147 : vector<1x128x128xbf16> to vector<128x128xbf16>
    %c10_85 = arith.constant 10 : index
    %c0_86 = arith.constant 0 : index
    %c0_87 = arith.constant 0 : index
    %149 = vector.load %arg3[%c10_85, %c0_86, %c0_87] : memref<19x1x128xf32, #tpu.memory_space<vmem>>, vector<1x1x128xf32>
    %150 = vector.shape_cast %149 : vector<1x1x128xf32> to vector<1x128xf32>
    %151 = arith.truncf %146 : vector<8x128xf32> to vector<8x128xbf16>
    %cst_88 = arith.constant dense<0.000000e+00> : vector<8x128xf32>
    %152 = tpu.matmul %151, %148, %cst_88 {dimension_numbers = #tpu.dot_dimension_numbers<[1], [0], [0], [1], [0, 0, 1, 1], [], []>} : vector<8x128xbf16>, vector<128x128xbf16>, vector<8x128xf32> -> vector<8x128xf32>
    %153 = vector.broadcast %150 : vector<1x128xf32> to vector<8x128xf32>
    %154 = arith.addf %152, %153 : vector<8x128xf32>
    %cst_89 = arith.constant 0.000000e+00 : f32
    %155 = vector.broadcast %cst_89 : f32 to vector<8x128xf32>
    %156 = arith.subf %155, %154 : vector<8x128xf32>
    %157 = math.exp %156 : vector<8x128xf32>
    %cst_90 = arith.constant 1.000000e+00 : f32
    %158 = vector.broadcast %cst_90 : f32 to vector<8x128xf32>
    %159 = arith.addf %158, %157 : vector<8x128xf32>
    %160 = tpu.reciprocal %159 {approx = true} : vector<8x128xf32> -> vector<8x128xf32>
    %c11 = arith.constant 11 : index
    %c0_91 = arith.constant 0 : index
    %c0_92 = arith.constant 0 : index
    %161 = vector.load %arg2[%c11, %c0_91, %c0_92] : memref<19x128x128xbf16, #tpu.memory_space<vmem>>, vector<1x128x128xbf16>
    %162 = vector.shape_cast %161 : vector<1x128x128xbf16> to vector<128x128xbf16>
    %c11_93 = arith.constant 11 : index
    %c0_94 = arith.constant 0 : index
    %c0_95 = arith.constant 0 : index
    %163 = vector.load %arg3[%c11_93, %c0_94, %c0_95] : memref<19x1x128xf32, #tpu.memory_space<vmem>>, vector<1x1x128xf32>
    %164 = vector.shape_cast %163 : vector<1x1x128xf32> to vector<1x128xf32>
    %165 = arith.truncf %160 : vector<8x128xf32> to vector<8x128xbf16>
    %cst_96 = arith.constant dense<0.000000e+00> : vector<8x128xf32>
    %166 = tpu.matmul %165, %162, %cst_96 {dimension_numbers = #tpu.dot_dimension_numbers<[1], [0], [0], [1], [0, 0, 1, 1], [], []>} : vector<8x128xbf16>, vector<128x128xbf16>, vector<8x128xf32> -> vector<8x128xf32>
    %167 = vector.broadcast %164 : vector<1x128xf32> to vector<8x128xf32>
    %168 = arith.addf %166, %167 : vector<8x128xf32>
    %cst_97 = arith.constant 0.000000e+00 : f32
    %169 = vector.broadcast %cst_97 : f32 to vector<8x128xf32>
    %170 = arith.subf %169, %168 : vector<8x128xf32>
    %171 = math.exp %170 : vector<8x128xf32>
    %cst_98 = arith.constant 1.000000e+00 : f32
    %172 = vector.broadcast %cst_98 : f32 to vector<8x128xf32>
    %173 = arith.addf %172, %171 : vector<8x128xf32>
    %174 = tpu.reciprocal %173 {approx = true} : vector<8x128xf32> -> vector<8x128xf32>
    %cst_99 = arith.constant 0.000000e+00 : f32
    %175 = vector.broadcast %cst_99 : f32 to vector<8x128xf32>
    %176 = arith.subf %175, %174 : vector<8x128xf32>
    %177 = math.exp %176 : vector<8x128xf32>
    %cst_100 = arith.constant 1.000000e+00 : f32
    %178 = vector.broadcast %cst_100 : f32 to vector<8x128xf32>
    %179 = arith.addf %178, %177 : vector<8x128xf32>
    %180 = tpu.reciprocal %179 {approx = true} : vector<8x128xf32> -> vector<8x128xf32>
    %cst_101 = arith.constant 0.000000e+00 : f32
    %181 = vector.broadcast %cst_101 : f32 to vector<8x128xf32>
    %182 = arith.subf %181, %180 : vector<8x128xf32>
    %183 = math.exp %182 : vector<8x128xf32>
    %cst_102 = arith.constant 1.000000e+00 : f32
    %184 = vector.broadcast %cst_102 : f32 to vector<8x128xf32>
    %185 = arith.addf %184, %183 : vector<8x128xf32>
    %186 = tpu.reciprocal %185 {approx = true} : vector<8x128xf32> -> vector<8x128xf32>
    %cst_103 = arith.constant 0.000000e+00 : f32
    %187 = vector.broadcast %cst_103 : f32 to vector<8x128xf32>
    %188 = arith.subf %187, %186 : vector<8x128xf32>
    %189 = math.exp %188 : vector<8x128xf32>
    %cst_104 = arith.constant 1.000000e+00 : f32
    %190 = vector.broadcast %cst_104 : f32 to vector<8x128xf32>
    %191 = arith.addf %190, %189 : vector<8x128xf32>
    %192 = tpu.reciprocal %191 {approx = true} : vector<8x128xf32> -> vector<8x128xf32>
    %cst_105 = arith.constant 0.000000e+00 : f32
    %193 = vector.broadcast %cst_105 : f32 to vector<8x128xf32>
    %194 = arith.subf %193, %192 : vector<8x128xf32>
    %195 = math.exp %194 : vector<8x128xf32>
    %cst_106 = arith.constant 1.000000e+00 : f32
    %196 = vector.broadcast %cst_106 : f32 to vector<8x128xf32>
    %197 = arith.addf %196, %195 : vector<8x128xf32>
    %198 = tpu.reciprocal %197 {approx = true} : vector<8x128xf32> -> vector<8x128xf32>
    %cst_107 = arith.constant 0.000000e+00 : f32
    %199 = vector.broadcast %cst_107 : f32 to vector<8x128xf32>
    %200 = arith.subf %199, %198 : vector<8x128xf32>
    %201 = math.exp %200 : vector<8x128xf32>
    %cst_108 = arith.constant 1.000000e+00 : f32
    %202 = vector.broadcast %cst_108 : f32 to vector<8x128xf32>
    %203 = arith.addf %202, %201 : vector<8x128xf32>
    %204 = tpu.reciprocal %203 {approx = true} : vector<8x128xf32> -> vector<8x128xf32>
    %c12 = arith.constant 12 : index
    %c0_109 = arith.constant 0 : index
    %c0_110 = arith.constant 0 : index
    %205 = vector.load %arg2[%c12, %c0_109, %c0_110] : memref<19x128x128xbf16, #tpu.memory_space<vmem>>, vector<1x128x128xbf16>
    %206 = vector.shape_cast %205 : vector<1x128x128xbf16> to vector<128x128xbf16>
    %c12_111 = arith.constant 12 : index
    %c0_112 = arith.constant 0 : index
    %c0_113 = arith.constant 0 : index
    %207 = vector.load %arg3[%c12_111, %c0_112, %c0_113] : memref<19x1x128xf32, #tpu.memory_space<vmem>>, vector<1x1x128xf32>
    %208 = vector.shape_cast %207 : vector<1x1x128xf32> to vector<1x128xf32>
    %209 = arith.truncf %204 : vector<8x128xf32> to vector<8x128xbf16>
    %cst_114 = arith.constant dense<0.000000e+00> : vector<8x128xf32>
    %210 = tpu.matmul %209, %206, %cst_114 {dimension_numbers = #tpu.dot_dimension_numbers<[1], [0], [0], [1], [0, 0, 1, 1], [], []>} : vector<8x128xbf16>, vector<128x128xbf16>, vector<8x128xf32> -> vector<8x128xf32>
    %211 = vector.broadcast %208 : vector<1x128xf32> to vector<8x128xf32>
    %212 = arith.addf %210, %211 : vector<8x128xf32>
    %cst_115 = arith.constant 0.000000e+00 : f32
    %213 = vector.broadcast %cst_115 : f32 to vector<8x128xf32>
    %214 = arith.subf %213, %212 : vector<8x128xf32>
    %215 = math.exp %214 : vector<8x128xf32>
    %cst_116 = arith.constant 1.000000e+00 : f32
    %216 = vector.broadcast %cst_116 : f32 to vector<8x128xf32>
    %217 = arith.addf %216, %215 : vector<8x128xf32>
    %218 = tpu.reciprocal %217 {approx = true} : vector<8x128xf32> -> vector<8x128xf32>
    %c13 = arith.constant 13 : index
    %c0_117 = arith.constant 0 : index
    %c0_118 = arith.constant 0 : index
    %219 = vector.load %arg2[%c13, %c0_117, %c0_118] : memref<19x128x128xbf16, #tpu.memory_space<vmem>>, vector<1x128x128xbf16>
    %220 = vector.shape_cast %219 : vector<1x128x128xbf16> to vector<128x128xbf16>
    %c13_119 = arith.constant 13 : index
    %c0_120 = arith.constant 0 : index
    %c0_121 = arith.constant 0 : index
    %221 = vector.load %arg3[%c13_119, %c0_120, %c0_121] : memref<19x1x128xf32, #tpu.memory_space<vmem>>, vector<1x1x128xf32>
    %222 = vector.shape_cast %221 : vector<1x1x128xf32> to vector<1x128xf32>
    %223 = arith.truncf %218 : vector<8x128xf32> to vector<8x128xbf16>
    %cst_122 = arith.constant dense<0.000000e+00> : vector<8x128xf32>
    %224 = tpu.matmul %223, %220, %cst_122 {dimension_numbers = #tpu.dot_dimension_numbers<[1], [0], [0], [1], [0, 0, 1, 1], [], []>} : vector<8x128xbf16>, vector<128x128xbf16>, vector<8x128xf32> -> vector<8x128xf32>
    %225 = vector.broadcast %222 : vector<1x128xf32> to vector<8x128xf32>
    %226 = arith.addf %224, %225 : vector<8x128xf32>
    %cst_123 = arith.constant 0.000000e+00 : f32
    %227 = vector.broadcast %cst_123 : f32 to vector<8x128xf32>
    %228 = arith.subf %227, %226 : vector<8x128xf32>
    %229 = math.exp %228 : vector<8x128xf32>
    %cst_124 = arith.constant 1.000000e+00 : f32
    %230 = vector.broadcast %cst_124 : f32 to vector<8x128xf32>
    %231 = arith.addf %230, %229 : vector<8x128xf32>
    %232 = tpu.reciprocal %231 {approx = true} : vector<8x128xf32> -> vector<8x128xf32>
    %c14 = arith.constant 14 : index
    %c0_125 = arith.constant 0 : index
    %c0_126 = arith.constant 0 : index
    %233 = vector.load %arg2[%c14, %c0_125, %c0_126] : memref<19x128x128xbf16, #tpu.memory_space<vmem>>, vector<1x128x128xbf16>
    %234 = vector.shape_cast %233 : vector<1x128x128xbf16> to vector<128x128xbf16>
    %c14_127 = arith.constant 14 : index
    %c0_128 = arith.constant 0 : index
    %c0_129 = arith.constant 0 : index
    %235 = vector.load %arg3[%c14_127, %c0_128, %c0_129] : memref<19x1x128xf32, #tpu.memory_space<vmem>>, vector<1x1x128xf32>
    %236 = vector.shape_cast %235 : vector<1x1x128xf32> to vector<1x128xf32>
    %237 = arith.truncf %232 : vector<8x128xf32> to vector<8x128xbf16>
    %cst_130 = arith.constant dense<0.000000e+00> : vector<8x128xf32>
    %238 = tpu.matmul %237, %234, %cst_130 {dimension_numbers = #tpu.dot_dimension_numbers<[1], [0], [0], [1], [0, 0, 1, 1], [], []>} : vector<8x128xbf16>, vector<128x128xbf16>, vector<8x128xf32> -> vector<8x128xf32>
    %239 = vector.broadcast %236 : vector<1x128xf32> to vector<8x128xf32>
    %240 = arith.addf %238, %239 : vector<8x128xf32>
    %cst_131 = arith.constant 0.000000e+00 : f32
    %241 = vector.broadcast %cst_131 : f32 to vector<8x128xf32>
    %242 = arith.subf %241, %240 : vector<8x128xf32>
    %243 = math.exp %242 : vector<8x128xf32>
    %cst_132 = arith.constant 1.000000e+00 : f32
    %244 = vector.broadcast %cst_132 : f32 to vector<8x128xf32>
    %245 = arith.addf %244, %243 : vector<8x128xf32>
    %246 = tpu.reciprocal %245 {approx = true} : vector<8x128xf32> -> vector<8x128xf32>
    %c15 = arith.constant 15 : index
    %c0_133 = arith.constant 0 : index
    %c0_134 = arith.constant 0 : index
    %247 = vector.load %arg2[%c15, %c0_133, %c0_134] : memref<19x128x128xbf16, #tpu.memory_space<vmem>>, vector<1x128x128xbf16>
    %248 = vector.shape_cast %247 : vector<1x128x128xbf16> to vector<128x128xbf16>
    %c15_135 = arith.constant 15 : index
    %c0_136 = arith.constant 0 : index
    %c0_137 = arith.constant 0 : index
    %249 = vector.load %arg3[%c15_135, %c0_136, %c0_137] : memref<19x1x128xf32, #tpu.memory_space<vmem>>, vector<1x1x128xf32>
    %250 = vector.shape_cast %249 : vector<1x1x128xf32> to vector<1x128xf32>
    %251 = arith.truncf %246 : vector<8x128xf32> to vector<8x128xbf16>
    %cst_138 = arith.constant dense<0.000000e+00> : vector<8x128xf32>
    %252 = tpu.matmul %251, %248, %cst_138 {dimension_numbers = #tpu.dot_dimension_numbers<[1], [0], [0], [1], [0, 0, 1, 1], [], []>} : vector<8x128xbf16>, vector<128x128xbf16>, vector<8x128xf32> -> vector<8x128xf32>
    %253 = vector.broadcast %250 : vector<1x128xf32> to vector<8x128xf32>
    %254 = arith.addf %252, %253 : vector<8x128xf32>
    %cst_139 = arith.constant 0.000000e+00 : f32
    %255 = vector.broadcast %cst_139 : f32 to vector<8x128xf32>
    %256 = arith.subf %255, %254 : vector<8x128xf32>
    %257 = math.exp %256 : vector<8x128xf32>
    %cst_140 = arith.constant 1.000000e+00 : f32
    %258 = vector.broadcast %cst_140 : f32 to vector<8x128xf32>
    %259 = arith.addf %258, %257 : vector<8x128xf32>
    %260 = tpu.reciprocal %259 {approx = true} : vector<8x128xf32> -> vector<8x128xf32>
    %c16 = arith.constant 16 : index
    %c0_141 = arith.constant 0 : index
    %c0_142 = arith.constant 0 : index
    %261 = vector.load %arg2[%c16, %c0_141, %c0_142] : memref<19x128x128xbf16, #tpu.memory_space<vmem>>, vector<1x128x128xbf16>
    %262 = vector.shape_cast %261 : vector<1x128x128xbf16> to vector<128x128xbf16>
    %c16_143 = arith.constant 16 : index
    %c0_144 = arith.constant 0 : index
    %c0_145 = arith.constant 0 : index
    %263 = vector.load %arg3[%c16_143, %c0_144, %c0_145] : memref<19x1x128xf32, #tpu.memory_space<vmem>>, vector<1x1x128xf32>
    %264 = vector.shape_cast %263 : vector<1x1x128xf32> to vector<1x128xf32>
    %265 = arith.truncf %260 : vector<8x128xf32> to vector<8x128xbf16>
    %cst_146 = arith.constant dense<0.000000e+00> : vector<8x128xf32>
    %266 = tpu.matmul %265, %262, %cst_146 {dimension_numbers = #tpu.dot_dimension_numbers<[1], [0], [0], [1], [0, 0, 1, 1], [], []>} : vector<8x128xbf16>, vector<128x128xbf16>, vector<8x128xf32> -> vector<8x128xf32>
    %267 = vector.broadcast %264 : vector<1x128xf32> to vector<8x128xf32>
    %268 = arith.addf %266, %267 : vector<8x128xf32>
    %cst_147 = arith.constant 0.000000e+00 : f32
    %269 = vector.broadcast %cst_147 : f32 to vector<8x128xf32>
    %270 = arith.subf %269, %268 : vector<8x128xf32>
    %271 = math.exp %270 : vector<8x128xf32>
    %cst_148 = arith.constant 1.000000e+00 : f32
    %272 = vector.broadcast %cst_148 : f32 to vector<8x128xf32>
    %273 = arith.addf %272, %271 : vector<8x128xf32>
    %274 = tpu.reciprocal %273 {approx = true} : vector<8x128xf32> -> vector<8x128xf32>
    %c17 = arith.constant 17 : index
    %c0_149 = arith.constant 0 : index
    %c0_150 = arith.constant 0 : index
    %275 = vector.load %arg2[%c17, %c0_149, %c0_150] : memref<19x128x128xbf16, #tpu.memory_space<vmem>>, vector<1x128x128xbf16>
    %276 = vector.shape_cast %275 : vector<1x128x128xbf16> to vector<128x128xbf16>
    %c17_151 = arith.constant 17 : index
    %c0_152 = arith.constant 0 : index
    %c0_153 = arith.constant 0 : index
    %277 = vector.load %arg3[%c17_151, %c0_152, %c0_153] : memref<19x1x128xf32, #tpu.memory_space<vmem>>, vector<1x1x128xf32>
    %278 = vector.shape_cast %277 : vector<1x1x128xf32> to vector<1x128xf32>
    %279 = arith.truncf %274 : vector<8x128xf32> to vector<8x128xbf16>
    %cst_154 = arith.constant dense<0.000000e+00> : vector<8x128xf32>
    %280 = tpu.matmul %279, %276, %cst_154 {dimension_numbers = #tpu.dot_dimension_numbers<[1], [0], [0], [1], [0, 0, 1, 1], [], []>} : vector<8x128xbf16>, vector<128x128xbf16>, vector<8x128xf32> -> vector<8x128xf32>
    %281 = vector.broadcast %278 : vector<1x128xf32> to vector<8x128xf32>
    %282 = arith.addf %280, %281 : vector<8x128xf32>
    %cst_155 = arith.constant 0.000000e+00 : f32
    %283 = vector.broadcast %cst_155 : f32 to vector<8x128xf32>
    %284 = arith.subf %283, %282 : vector<8x128xf32>
    %285 = math.exp %284 : vector<8x128xf32>
    %cst_156 = arith.constant 1.000000e+00 : f32
    %286 = vector.broadcast %cst_156 : f32 to vector<8x128xf32>
    %287 = arith.addf %286, %285 : vector<8x128xf32>
    %288 = tpu.reciprocal %287 {approx = true} : vector<8x128xf32> -> vector<8x128xf32>
    %c18 = arith.constant 18 : index
    %c0_157 = arith.constant 0 : index
    %c0_158 = arith.constant 0 : index
    %289 = vector.load %arg2[%c18, %c0_157, %c0_158] : memref<19x128x128xbf16, #tpu.memory_space<vmem>>, vector<1x128x128xbf16>
    %290 = vector.shape_cast %289 : vector<1x128x128xbf16> to vector<128x128xbf16>
    %c18_159 = arith.constant 18 : index
    %c0_160 = arith.constant 0 : index
    %c0_161 = arith.constant 0 : index
    %291 = vector.load %arg3[%c18_159, %c0_160, %c0_161] : memref<19x1x128xf32, #tpu.memory_space<vmem>>, vector<1x1x128xf32>
    %292 = vector.shape_cast %291 : vector<1x1x128xf32> to vector<1x128xf32>
    %293 = arith.truncf %288 : vector<8x128xf32> to vector<8x128xbf16>
    %cst_162 = arith.constant dense<0.000000e+00> : vector<8x128xf32>
    %294 = tpu.matmul %293, %290, %cst_162 {dimension_numbers = #tpu.dot_dimension_numbers<[1], [0], [0], [1], [0, 0, 1, 1], [], []>} : vector<8x128xbf16>, vector<128x128xbf16>, vector<8x128xf32> -> vector<8x128xf32>
    %295 = vector.broadcast %292 : vector<1x128xf32> to vector<8x128xf32>
    %296 = arith.addf %294, %295 : vector<8x128xf32>
    %cst_163 = arith.constant 0.000000e+00 : f32
    %297 = vector.broadcast %cst_163 : f32 to vector<8x128xf32>
    %298 = arith.subf %297, %296 : vector<8x128xf32>
    %299 = math.exp %298 : vector<8x128xf32>
    %cst_164 = arith.constant 1.000000e+00 : f32
    %300 = vector.broadcast %cst_164 : f32 to vector<8x128xf32>
    %301 = arith.addf %300, %299 : vector<8x128xf32>
    %302 = tpu.reciprocal %301 {approx = true} : vector<8x128xf32> -> vector<8x128xf32>
    %c0_165 = arith.constant 0 : index
    %c0_166 = arith.constant 0 : index
    %303 = vector.load %arg4[%c0_165, %c0_166] : memref<8x128xf32, #tpu.memory_space<vmem>>, vector<8x128xf32>
    tpu.vector_store %arg4[%c0_165, %c0_166], %302 {strides = array<i32>} : memref<8x128xf32, #tpu.memory_space<vmem>>, vector<8x128xf32>,
    return
  }
  func.func @transform_0(%arg0: i32) -> (i32, i32) {
    %c0_i32 = arith.constant 0 : i32
    %c0_i32_0 = arith.constant 0 : i32
    return %arg0, %c0_i32 : i32, i32
  }
  func.func @transform_1(%arg0: i32) -> (i32, i32, i32) {
    %c0_i32 = arith.constant 0 : i32
    %c0_i32_0 = arith.constant 0 : i32
    %c0_i32_1 = arith.constant 0 : i32
    %c0_i32_2 = arith.constant 0 : i32
    return %c0_i32, %c0_i32_0, %c0_i32_1 : i32, i32, i32
  }
  func.func @transform_2(%arg0: i32) -> (i32, i32, i32) {
    %c0_i32 = arith.constant 0 : i32
    %c0_i32_0 = arith.constant 0 : i32
    %c0_i32_1 = arith.constant 0 : i32
    %c0_i32_2 = arith.constant 0 : i32
    return %c0_i32, %c0_i32_0, %c0_i32_1 : i32, i32, i32
  }
  func.func @transform_3(%arg0: i32) -> (i32, i32) {
    %c0_i32 = arith.constant 0 : i32
    %c0_i32_0 = arith.constant 0 : i32
    return %arg0, %c0_i32 : i32, i32
  }
}

</mosaic_0001>

<bundles_post_ra>
// kernel: tpu_custom_call.1
= control target key start
LH: loop header
LB: loop body
LE: loop exit
PB: predicated region body
PF: predicated region fallthrough
CT: control target
= control target key end

     0   :  { %8 = vsyncpa [#allocation3], 0  ;;  %s3664_s0 = inlined_call_operand.hbm [shape: f32[8,128], index: 0, kind: input, shape index: {}]   ;;  %s3665_s1 = inlined_call_operand.hbm [shape: bf16[19,128,128], index: 1, kind: input, shape index: {}]   ;;  %s3666_s2 = inlined_call_operand.hbm [shape: f32[19,1,128], index: 2, kind: input, shape index: {}]   ;;  %s3667_s3 = inlined_call_operand.hbm [shape: f32[8,128], index: 3, kind: output, shape index: {}]  }
   0x1   :  { %9 = vsyncpa [#allocation6], 0 }
   0x2   :  { %10 = vsyncpa [#allocation4], 0  ;;  %s3432_s12 = smov [#allocation5]  }
   0x3   :  { %s26_s13 = sshll.u32 %s3432_s12, 4  ;;  %s27_s13 = int_to_ptr.vmem [resolvable:$true] %s26_s13 }
   0x4   :  { %s3354_s14 = scalar_lea.vmem %s27_s13, 19456  ;;  %p3359_p1 = scmp.lt.s32.totalorder %s27_s13, %s27_s13 }
   0x5   :  { %p3355_p0 = scmp.ne.s32.totalorder %s27_s13, %s3354_s14  ;;  %p3360_p2 = scmp.lt.s32.totalorder %s3354_s14, %s3354_s14 }
   0x7   :  { %p3361_p3 = por %p3360_p2, %p3359_p1 }
   0x9   :  { %p3362_p4 = pnand %p3361_p3, %p3355_p0 }
   0xb   :  { %3365 = shalt.err (!%p3362_p4)
}
   0xc   :  { %s3433_s15 = smov 64   ;;  %s3434_s16 = smov 4  }
   0xd   :  { %32 = dma.hbm_to_vmem [thread:$0]  %s3665_s1, 19456, %s27_s13, [#allocation6], %s3433_s15, %s3433_s15, %s3434_s16  }
   0xe   :  { %s3435_s19 = smov [#allocation2]   ;;  %s3436_s21 = smov [#allocation7]  }
   0xf   :  { %s17_s20 = sshll.u32 %s3435_s19, 4  ;;  %s38_s22 = sshll.u32 %s3436_s21, 4  ;;  %s18_s20 = int_to_ptr.vmem [resolvable:$true] %s17_s20  ;;  %s39_s22 = int_to_ptr.vmem [resolvable:$true] %s38_s22 }
  0x10   :  { %s3374_s23 = scalar_lea.vmem %s18_s20, 128  ;;  %p3379_p6 = scmp.lt.s32.totalorder %s18_s20, %s18_s20 }
  0x11   :  { %p3375_p5 = scmp.ne.s32.totalorder %s18_s20, %s3374_s23  ;;  %p3380_p7 = scmp.lt.s32.totalorder %s3374_s23, %s3374_s23 }
  0x13   :  { %p3381_p8 = por %p3380_p7, %p3379_p6 }
  0x15   :  { %p3382_p9 = pnand %p3381_p8, %p3375_p5 }
  0x17   :  { %3385 = shalt.err (!%p3382_p9)
}
  0x18   :  { %20 = dma.hbm_to_vmem [thread:$0]  %s3664_s0, 128, %s18_s20, [#allocation3]  }
  0x19   :  { %s3394_s26 = scalar_lea.vmem %s39_s22, 304  ;;  %s3398_s1 = scalar_lea.vmem %s39_s22, 320 }
  0x1a   :  { %p3395_p10 = scmp.ne.s32.totalorder %s39_s22, %s3394_s26  ;;  %p3399_p11 = scmp.lt.s32.totalorder %s39_s22, %s39_s22 }
  0x1b   :  { %p3400_p12 = scmp.lt.s32.totalorder %s3398_s1, %s3394_s26 }
  0x1d   :  { %p3401_p13 = por %p3400_p12, %p3399_p11 }
  0x1f   :  { %p3402_p0 = pnand %p3401_p13, %p3395_p10 }
  0x21   :  { %3405 = shalt.err (!%p3402_p0)
}
  0x22   :  { %s3437_s27 = smov 16   ;;  %s3438_s28 = smov 1  }
  0x23   :  { %44 = dma.hbm_to_vmem [thread:$0]  %s3666_s2, 304, %s39_s22, [#allocation6], %s3437_s27, %s3437_s27, %s3438_s28  }
  0x24   :  { %3426 = dma.done.wait [#allocation3], 128  }
  0x25   :  { %3427 = vsyncadd [#allocation3], 4294967168 }
  0x26   :  { %3428 = dma.done.wait [#allocation6], 19760  }
  0x27   :  { %3429 = vsyncadd [#allocation6], 4294947536  ;;  %v3439_v0 = vmov 0.0   ;;  %vm3440_vm0 = vmmov 0   ;;  %v3094_v1 = vld [vmem:[#allocation5 + $0x38] sm:$0xff]   ;;  %v3095_v2 = vld [vmem:[#allocation5 + $0x30] sm:$0xff]  }
  0x28   :  { %2704 = vmatprep.subr.bf16.mxu0 %v3439_v0  ;;  %2720 = vmatprep.mubr.msk.bf16.mxu0 %vm3440_vm0, %v3439_v0  ;;  %v3096_v3 = vld [vmem:[#allocation5 + $0x28] sm:$0xff]   ;;  %v3097_v4 = vld [vmem:[#allocation5 + $0x20] sm:$0xff]   ;;  %v3098_v5 = vld [vmem:[#allocation5 + $0x18] sm:$0xff]   ;;  %s3441_s0 = smov [#allocation8]  }
  0x29   :  { %2724 = vmatprep.subr.bf16.mxu1 %v3439_v0  ;;  %2740 = vmatprep.mubr.msk.bf16.mxu1 %vm3440_vm0, %v3439_v0  ;;  %v3099_v6 = vld [vmem:[#allocation5 + $0x10] sm:$0xff]   ;;  %v3100_v7 = vld [vmem:[#allocation5 + $0x8] sm:$0xff]   ;;  %v3101_v8 = vld [vmem:[#allocation5] sm:$0xff]   ;;  %s2352_s2 = sshll.u32 %s3441_s0, 4  ;;  %s2353_s2 = int_to_ptr.vmem [resolvable:$true] %s2352_s2 }
  0x2a   :  { %2705 = vmatpush3.bf16.msra.mxu0 %v3094_v1  ;;  %v55_v9 = vld [vmem:[#allocation2] sm:$0xff]  ;;  %v3103_v12 = vld [vmem:[#allocation5 + $0x70] sm:$0xff]   ;;  %v3104_v13 = vld [vmem:[#allocation5 + $0x68] sm:$0xff]   ;;  %s3406_s4 = scalar_lea.vmem %s2353_s2, 128  ;;  %p3411_p2 = scmp.lt.s32.totalorder %s2353_s2, %s2353_s2 }
  0x2b   :  { %2706 = vmatprep.subr.bf16.mxu0 %v3439_v0  ;;  %v73_v10 = vpack.c.bf16 %v55_v9, %v55_v9  ;;  %v3102_v11 = vld [vmem:[#allocation5 + $0x78] sm:$0xff]   ;;  %v3105_v14 = vld [vmem:[#allocation5 + $0x60] sm:$0xff]   ;;  %v3107_v16 = vld [vmem:[#allocation5 + $0x50] sm:$0xff]   ;;  %p3407_p1 = scmp.ne.s32.totalorder %s2353_s2, %s3406_s4  ;;  %p3412_p3 = scmp.lt.s32.totalorder %s3406_s4, %s3406_s4 }
  0x2c   :  { %2725 = vmatpush3.bf16.msra.mxu1 %v3102_v11  ;;  %v3106_v15 = vld [vmem:[#allocation5 + $0x58] sm:$0xff]   ;;  %v3108_v17 = vld [vmem:[#allocation5 + $0x48] sm:$0xff]   ;;  %v3109_v18 = vld [vmem:[#allocation5 + $0x40] sm:$0xff]  }
  0x2d   :  { %2726 = vmatprep.subr.bf16.mxu1 %v3439_v0  ;;  %v2362_v19 = vld [vmem:[#allocation7] ss:$0 sm:$0xff]  ;;  %v3110_v31 = vld [vmem:[#allocation5 + $0xb8] sm:$0xff]   ;;  %v3111_v32 = vld [vmem:[#allocation5 + $0xb0] sm:$0xff]   ;;  %p3413_p4 = por %p3412_p3, %p3411_p2 }
  0x2e   :  { %2707 = vmatpush3.bf16.msra.mxu0 %v3095_v2  ;;  %v3112_v33 = vld [vmem:[#allocation5 + $0xa8] sm:$0xff]   ;;  %v3113_v34 = vld [vmem:[#allocation5 + $0xa0] sm:$0xff]   ;;  %v3114_v35 = vld [vmem:[#allocation5 + $0x98] sm:$0xff]  }
  0x2f   :  { %2708 = vmatprep.subr.bf16.mxu0 %v3439_v0  ;;  %v3115_v36 = vld [vmem:[#allocation5 + $0x90] sm:$0xff]   ;;  %v3116_v37 = vld [vmem:[#allocation5 + $0x88] sm:$0xff]   ;;  %v3117_v38 = vld [vmem:[#allocation5 + $0x80] sm:$0xff]   ;;  %p3414_p5 = pnand %p3413_p4, %p3407_p1 }
  0x30   :  { %2727 = vmatpush3.bf16.msra.mxu1 %v3103_v12  ;;  %v2371_v39 = vld [vmem:[#allocation7 + $0x1] ss:$0 sm:$0xff]  ;;  %v3118_v51 = vld [vmem:[#allocation5 + $0xf8] sm:$0xff]   ;;  %v3119_v52 = vld [vmem:[#allocation5 + $0xf0] sm:$0xff]  }
  0x31   :  { %2728 = vmatprep.subr.bf16.mxu1 %v3439_v0  ;;  %v3120_v53 = vld [vmem:[#allocation5 + $0xe8] sm:$0xff]   ;;  %v3121_v54 = vld [vmem:[#allocation5 + $0xe0] sm:$0xff]   ;;  %v3122_v55 = vld [vmem:[#allocation5 + $0xd8] sm:$0xff]  }
  0x32   :  { %2709 = vmatpush3.bf16.msra.mxu0 %v3096_v3  ;;  %v3123_v56 = vld [vmem:[#allocation5 + $0xd0] sm:$0xff]   ;;  %v3124_v57 = vld [vmem:[#allocation5 + $0xc8] sm:$0xff]   ;;  %v3125_v58 = vld [vmem:[#allocation5 + $0xc0] sm:$0xff]  }
  0x33   :  { %2710 = vmatprep.subr.bf16.mxu0 %v3439_v0  ;;  %v2380_v59 = vld [vmem:[#allocation7 + $0x2] ss:$0 sm:$0xff]  ;;  %v3127_v9 = vld [vmem:[#allocation5 + $0x130] sm:$0xff]   ;;  %v3130_v12 = vld [vmem:[#allocation5 + $0x118] sm:$0xff]  }
  0x34   :  { %2729 = vmatpush3.bf16.msra.mxu1 %v3104_v13  ;;  %v3129_v11 = vld [vmem:[#allocation5 + $0x120] sm:$0xff]   ;;  %v3131_v13 = vld [vmem:[#allocation5 + $0x110] sm:$0xff]  }
  0x35   :  { %2730 = vmatprep.subr.bf16.mxu1 %v3439_v0 }
  0x36   :  { %2711 = vmatpush3.bf16.msra.mxu0 %v3097_v4 }
  0x37   :  { %2712 = vmatprep.subr.bf16.mxu0 %v3439_v0 }
  0x38   :  { %2731 = vmatpush3.bf16.msra.mxu1 %v3105_v14  ;;  %v3132_v14 = vld [vmem:[#allocation5 + $0x108] sm:$0xff]  }
  0x39   :  { %2732 = vmatprep.subr.bf16.mxu1 %v3439_v0 }
  0x3a   :  { %2713 = vmatpush3.bf16.msra.mxu0 %v3098_v5 }
  0x3b   :  { %2714 = vmatprep.subr.bf16.mxu0 %v3439_v0 }
  0x3c   :  { %2733 = vmatpush3.bf16.msra.mxu1 %v3106_v15  ;;  %v3133_v15 = vld [vmem:[#allocation5 + $0x100] sm:$0xff]  }
  0x3d   :  { %2734 = vmatprep.subr.bf16.mxu1 %v3439_v0 }
  0x3e   :  { %2715 = vmatpush3.bf16.msra.mxu0 %v3099_v6 }
  0x3f   :  { %2716 = vmatprep.subr.bf16.mxu0 %v3439_v0 }
  0x40   :  { %2735 = vmatpush3.bf16.msra.mxu1 %v3107_v16  ;;  %v2389_v16 = vld [vmem:[#allocation7 + $0x3] ss:$0 sm:$0xff] }
  0x41   :  { %2736 = vmatprep.subr.bf16.mxu1 %v3439_v0 }
  0x42   :  { %2717 = vmatpush3.bf16.msra.mxu0 %v3100_v7 }
  0x43   :  { %2718 = vmatprep.subr.bf16.mxu0 %v3439_v0 }
  0x44   :  { %2737 = vmatpush3.bf16.msra.mxu1 %v3108_v17 }
  0x45   :  { %2738 = vmatprep.subr.bf16.mxu1 %v3439_v0 }
  0x46   :  { %2719 = vmatpush3.bf16.msra.mxu0 %v3101_v8  ;;  %v3126_v8 = vld [vmem:[#allocation5 + $0x138] sm:$0xff]  }
  0x47   :  { %2744 = vmatprep.subr.bf16.mxu0 %v3439_v0 }
  0x48   :  { %2739 = vmatpush3.bf16.msra.mxu1 %v3109_v18 }
  0x49   :  { %2721 = vmatmul.mubr.bf16.vlgmr.msra.gmra.mxu0 %v73_v10  ;;  %2764 = vmatprep.subr.bf16.mxu1 %v3439_v0  ;;  %v3128_v10 = vld [vmem:[#allocation5 + $0x128] sm:$0xff]  }
  0x4a   :  { %2760 = vmatprep.mubr.msk.bf16.mxu0 %vm3440_vm0, %v3439_v0  ;;  %2745 = vmatpush3.bf16.msra.mxu0 %v3110_v31  ;;  %v3137_v31 = vld [vmem:[#allocation5 + $0x160] sm:$0xff]  }
  0x4b   :  { %2746 = vmatprep.subr.bf16.mxu0 %v3439_v0 }
  0x4e   :  { %2747 = vmatpush3.bf16.msra.mxu0 %v3111_v32  ;;  %v3138_v32 = vld [vmem:[#allocation5 + $0x158] sm:$0xff]  }
  0x4f   :  { %2748 = vmatprep.subr.bf16.mxu0 %v3439_v0 }
  0x52   :  { %2749 = vmatpush3.bf16.msra.mxu0 %v3112_v33  ;;  %v3139_v33 = vld [vmem:[#allocation5 + $0x150] sm:$0xff]  }
  0x53   :  { %2750 = vmatprep.subr.bf16.mxu0 %v3439_v0 }
  0x56   :  { %2751 = vmatpush3.bf16.msra.mxu0 %v3113_v34  ;;  %v3140_v34 = vld [vmem:[#allocation5 + $0x148] sm:$0xff]  }
  0x57   :  { %2752 = vmatprep.subr.bf16.mxu0 %v3439_v0 }
  0x5a   :  { %2753 = vmatpush3.bf16.msra.mxu0 %v3114_v35  ;;  %v3141_v35 = vld [vmem:[#allocation5 + $0x140] sm:$0xff]  }
  0x5b   :  { %2754 = vmatprep.subr.bf16.mxu0 %v3439_v0 }
  0x5e   :  { %2755 = vmatpush3.bf16.msra.mxu0 %v3115_v36  ;;  %v2398_v36 = vld [vmem:[#allocation7 + $0x4] ss:$0 sm:$0xff] }
  0x5f   :  { %2756 = vmatprep.subr.bf16.mxu0 %v3439_v0 }
  0x62   :  { %2757 = vmatpush3.bf16.msra.mxu0 %v3116_v37 }
  0x63   :  { %2758 = vmatprep.subr.bf16.mxu0 %v3439_v0 }
  0x66   :  { %2759 = vmatpush3.bf16.msra.mxu0 %v3117_v38 }
  0x67   :  { %2784 = vmatprep.subr.bf16.mxu0 %v3439_v0 }
 0x109   :  { %v162_v20 = vpop.f32.mrf.mxu0 }
 0x10a   :  { %v163_v21 = vadd.f32 %v2362_v19, %v162_v20 }
 0x10b   :  { %v2722_v22 = vpop.f32.mrf.mxu0 }
 0x10c   :  { %v168_v23 = vsub.f32 0.0, %v163_v21 }
 0x10d   :  { %v165_v24 = vpop.f32.mrf.mxu0 }
 0x10e   :  { %v169_v25 = vmul.f32 1.442695, %v168_v23 }
 0x10f   :  { %v2723_v26 = vpop.f32.mrf.mxu0 }
 0x110   :  { %3246 = vpow2.f32 %v169_v25 }
 0x11d   :  { %v3247_v27 = vpop.eup %3246 }
 0x11e   :  { %v171_v28 = vadd.f32 1.0, %v3247_v27 }
 0x120   :  { %3248 = vrcp.f32 %v171_v28  ;;  %v3134_v28 = vld [vmem:[#allocation5 + $0x178] sm:$0xff]  }
 0x12d   :  { %v3249_v29 = vpop.eup %3248 }
 0x12e   :  { %v192_v30 = vpack.c.bf16 %v3249_v29, %v3249_v29  ;;  %v3135_v29 = vld [vmem:[#allocation5 + $0x170] sm:$0xff]  }
 0x130   :  { %2741 = vmatmul.mubr.bf16.vlgmr.msra.gmra.mxu1 %v192_v30  ;;  %v3136_v30 = vld [vmem:[#allocation5 + $0x168] sm:$0xff]  }
 0x131   :  { %2780 = vmatprep.mubr.msk.bf16.mxu1 %vm3440_vm0, %v3439_v0  ;;  %2765 = vmatpush3.bf16.msra.mxu1 %v3118_v51  ;;  %v3145_v51 = vld [vmem:[#allocation5 + $0x1a0] sm:$0xff]  }
 0x132   :  { %2766 = vmatprep.subr.bf16.mxu1 %v3439_v0 }
 0x135   :  { %2767 = vmatpush3.bf16.msra.mxu1 %v3119_v52  ;;  %v3146_v52 = vld [vmem:[#allocation5 + $0x198] sm:$0xff]  }
 0x136   :  { %2768 = vmatprep.subr.bf16.mxu1 %v3439_v0 }
 0x139   :  { %2769 = vmatpush3.bf16.msra.mxu1 %v3120_v53  ;;  %v3147_v53 = vld [vmem:[#allocation5 + $0x190] sm:$0xff]  }
 0x13a   :  { %2770 = vmatprep.subr.bf16.mxu1 %v3439_v0 }
 0x13d   :  { %2771 = vmatpush3.bf16.msra.mxu1 %v3121_v54  ;;  %v3148_v54 = vld [vmem:[#allocation5 + $0x188] sm:$0xff]  }
 0x13e   :  { %2772 = vmatprep.subr.bf16.mxu1 %v3439_v0 }
 0x141   :  { %2773 = vmatpush3.bf16.msra.mxu1 %v3122_v55  ;;  %v3149_v55 = vld [vmem:[#allocation5 + $0x180] sm:$0xff]  }
 0x142   :  { %2774 = vmatprep.subr.bf16.mxu1 %v3439_v0 }
 0x145   :  { %2775 = vmatpush3.bf16.msra.mxu1 %v3123_v56  ;;  %v2407_v56 = vld [vmem:[#allocation7 + $0x5] ss:$0 sm:$0xff] }
 0x146   :  { %2776 = vmatprep.subr.bf16.mxu1 %v3439_v0 }
 0x149   :  { %2777 = vmatpush3.bf16.msra.mxu1 %v3124_v57 }
 0x14a   :  { %2778 = vmatprep.subr.bf16.mxu1 %v3439_v0 }
 0x14d   :  { %2779 = vmatpush3.bf16.msra.mxu1 %v3125_v58 }
 0x14e   :  { %2804 = vmatprep.subr.bf16.mxu1 %v3439_v0 }
 0x1f0   :  { %v281_v40 = vpop.f32.mrf.mxu1 }
 0x1f1   :  { %v282_v41 = vadd.f32 %v2371_v39, %v281_v40 }
 0x1f2   :  { %v2742_v42 = vpop.f32.mrf.mxu1 }
 0x1f3   :  { %v287_v43 = vsub.f32 0.0, %v282_v41 }
 0x1f4   :  { %v284_v44 = vpop.f32.mrf.mxu1 }
 0x1f5   :  { %v288_v45 = vmul.f32 1.442695, %v287_v43 }
 0x1f6   :  { %v2743_v46 = vpop.f32.mrf.mxu1 }
 0x1f7   :  { %3250 = vpow2.f32 %v288_v45 }
 0x204   :  { %v3251_v47 = vpop.eup %3250 }
 0x205   :  { %v290_v48 = vadd.f32 1.0, %v3251_v47 }
 0x207   :  { %3252 = vrcp.f32 %v290_v48  ;;  %v3142_v48 = vld [vmem:[#allocation5 + $0x1b8] sm:$0xff]  }
 0x214   :  { %v3253_v49 = vpop.eup %3252 }
 0x215   :  { %v311_v50 = vpack.c.bf16 %v3253_v49, %v3253_v49  ;;  %v3143_v49 = vld [vmem:[#allocation5 + $0x1b0] sm:$0xff]  }
 0x217   :  { %2761 = vmatmul.mubr.bf16.vlgmr.msra.gmra.mxu0 %v311_v50  ;;  %v3144_v50 = vld [vmem:[#allocation5 + $0x1a8] sm:$0xff]  }
 0x218   :  { %2800 = vmatprep.mubr.msk.bf16.mxu0 %vm3440_vm0, %v3439_v0  ;;  %2785 = vmatpush3.bf16.msra.mxu0 %v3126_v8 }
 0x219   :  { %2786 = vmatprep.subr.bf16.mxu0 %v3439_v0 }
 0x21c   :  { %2787 = vmatpush3.bf16.msra.mxu0 %v3127_v9 }
 0x21d   :  { %2788 = vmatprep.subr.bf16.mxu0 %v3439_v0 }
 0x220   :  { %2789 = vmatpush3.bf16.msra.mxu0 %v3128_v10  ;;  %v3150_v10 = vld [vmem:[#allocation5 + $0x1f8] sm:$0xff]  }
 0x221   :  { %2790 = vmatprep.subr.bf16.mxu0 %v3439_v0 }
 0x224   :  { %2791 = vmatpush3.bf16.msra.mxu0 %v3129_v11  ;;  %v3151_v11 = vld [vmem:[#allocation5 + $0x1f0] sm:$0xff]  }
 0x225   :  { %2792 = vmatprep.subr.bf16.mxu0 %v3439_v0 }
 0x228   :  { %2793 = vmatpush3.bf16.msra.mxu0 %v3130_v12  ;;  %v3152_v12 = vld [vmem:[#allocation5 + $0x1e8] sm:$0xff]  }
 0x229   :  { %2794 = vmatprep.subr.bf16.mxu0 %v3439_v0 }
 0x22c   :  { %2795 = vmatpush3.bf16.msra.mxu0 %v3131_v13  ;;  %v3153_v13 = vld [vmem:[#allocation5 + $0x1e0] sm:$0xff]  }
 0x22d   :  { %2796 = vmatprep.subr.bf16.mxu0 %v3439_v0 }
 0x230   :  { %2797 = vmatpush3.bf16.msra.mxu0 %v3132_v14  ;;  %v3154_v14 = vld [vmem:[#allocation5 + $0x1d8] sm:$0xff]  }
 0x231   :  { %2798 = vmatprep.subr.bf16.mxu0 %v3439_v0 }
 0x234   :  { %2799 = vmatpush3.bf16.msra.mxu0 %v3133_v15  ;;  %v3155_v15 = vld [vmem:[#allocation5 + $0x1d0] sm:$0xff]  }
 0x235   :  { %2824 = vmatprep.subr.bf16.mxu0 %v3439_v0 }
 0x2d7   :  { %v400_v60 = vpop.f32.mrf.mxu0 }
 0x2d8   :  { %v401_v61 = vadd.f32 %v2380_v59, %v400_v60 }
 0x2d9   :  { %v2762_v62 = vpop.f32.mrf.mxu0 }
 0x2da   :  { %v406_v63 = vsub.f32 0.0, %v401_v61 }
 0x2db   :  { %v403_v1 = vpop.f32.mrf.mxu0 }
 0x2dc   :  { %v407_v2 = vmul.f32 1.442695, %v406_v63 }
 0x2dd   :  { %v2763_v3 = vpop.f32.mrf.mxu0 }
 0x2de   :  { %3254 = vpow2.f32 %v407_v2 }
 0x2eb   :  { %v3255_v4 = vpop.eup %3254 }
 0x2ec   :  { %v409_v5 = vadd.f32 1.0, %v3255_v4 }
 0x2ee   :  { %3256 = vrcp.f32 %v409_v5 }
 0x2fb   :  { %v3257_v6 = vpop.eup %3256 }
 0x2fc   :  { %v430_v7 = vpack.c.bf16 %v3257_v6, %v3257_v6 }
 0x2fe   :  { %2781 = vmatmul.mubr.bf16.vlgmr.msra.gmra.mxu1 %v430_v7 }
 0x2ff   :  { %2820 = vmatprep.mubr.msk.bf16.mxu1 %vm3440_vm0, %v3439_v0  ;;  %2805 = vmatpush3.bf16.msra.mxu1 %v3134_v28 }
 0x300   :  { %2806 = vmatprep.subr.bf16.mxu1 %v3439_v0 }
 0x303   :  { %2807 = vmatpush3.bf16.msra.mxu1 %v3135_v29 }
 0x304   :  { %2808 = vmatprep.subr.bf16.mxu1 %v3439_v0 }
 0x307   :  { %2809 = vmatpush3.bf16.msra.mxu1 %v3136_v30  ;;  %v3158_v30 = vld [vmem:[#allocation5 + $0x238] sm:$0xff]  }
 0x308   :  { %2810 = vmatprep.subr.bf16.mxu1 %v3439_v0 }
 0x30b   :  { %2811 = vmatpush3.bf16.msra.mxu1 %v3137_v31  ;;  %v3159_v31 = vld [vmem:[#allocation5 + $0x230] sm:$0xff]  }
 0x30c   :  { %2812 = vmatprep.subr.bf16.mxu1 %v3439_v0 }
 0x30f   :  { %2813 = vmatpush3.bf16.msra.mxu1 %v3138_v32  ;;  %v3160_v32 = vld [vmem:[#allocation5 + $0x228] sm:$0xff]  }
 0x310   :  { %2814 = vmatprep.subr.bf16.mxu1 %v3439_v0 }
 0x313   :  { %2815 = vmatpush3.bf16.msra.mxu1 %v3139_v33  ;;  %v3161_v33 = vld [vmem:[#allocation5 + $0x220] sm:$0xff]  }
 0x314   :  { %2816 = vmatprep.subr.bf16.mxu1 %v3439_v0 }
 0x317   :  { %2817 = vmatpush3.bf16.msra.mxu1 %v3140_v34  ;;  %v3162_v34 = vld [vmem:[#allocation5 + $0x218] sm:$0xff]  }
 0x318   :  { %2818 = vmatprep.subr.bf16.mxu1 %v3439_v0 }
 0x31b   :  { %2819 = vmatpush3.bf16.msra.mxu1 %v3141_v35  ;;  %v3163_v35 = vld [vmem:[#allocation5 + $0x210] sm:$0xff]  }
 0x31c   :  { %2844 = vmatprep.subr.bf16.mxu1 %v3439_v0 }
 0x3be   :  { %v519_v17 = vpop.f32.mrf.mxu1 }
 0x3bf   :  { %v520_v18 = vadd.f32 %v2389_v16, %v519_v17  ;;  %v3156_v16 = vld [vmem:[#allocation5 + $0x1c8] sm:$0xff]   ;;  %v3157_v17 = vld [vmem:[#allocation5 + $0x1c0] sm:$0xff]  }
 0x3c0   :  { %v2782_v19 = vpop.f32.mrf.mxu1 }
 0x3c1   :  { %v525_v20 = vsub.f32 0.0, %v520_v18  ;;  %v2416_v18 = vld [vmem:[#allocation7 + $0x6] ss:$0 sm:$0xff] }
 0x3c2   :  { %v522_v21 = vpop.f32.mrf.mxu1 }
 0x3c3   :  { %v526_v22 = vmul.f32 1.442695, %v525_v20 }
 0x3c4   :  { %v2783_v23 = vpop.f32.mrf.mxu1 }
 0x3c5   :  { %3258 = vpow2.f32 %v526_v22 }
 0x3d2   :  { %v3259_v24 = vpop.eup %3258 }
 0x3d3   :  { %v528_v25 = vadd.f32 1.0, %v3259_v24 }
 0x3d5   :  { %3260 = vrcp.f32 %v528_v25 }
 0x3e2   :  { %v3261_v26 = vpop.eup %3260 }
 0x3e3   :  { %v549_v27 = vpack.c.bf16 %v3261_v26, %v3261_v26 }
 0x3e5   :  { %2801 = vmatmul.mubr.bf16.vlgmr.msra.gmra.mxu0 %v549_v27 }
 0x3e6   :  { %2840 = vmatprep.mubr.msk.bf16.mxu0 %vm3440_vm0, %v3439_v0  ;;  %2825 = vmatpush3.bf16.msra.mxu0 %v3142_v48 }
 0x3e7   :  { %2826 = vmatprep.subr.bf16.mxu0 %v3439_v0 }
 0x3ea   :  { %2827 = vmatpush3.bf16.msra.mxu0 %v3143_v49 }
 0x3eb   :  { %2828 = vmatprep.subr.bf16.mxu0 %v3439_v0 }
 0x3ee   :  { %2829 = vmatpush3.bf16.msra.mxu0 %v3144_v50  ;;  %v3166_v50 = vld [vmem:[#allocation5 + $0x278] sm:$0xff]  }
 0x3ef   :  { %2830 = vmatprep.subr.bf16.mxu0 %v3439_v0 }
 0x3f2   :  { %2831 = vmatpush3.bf16.msra.mxu0 %v3145_v51  ;;  %v3167_v51 = vld [vmem:[#allocation5 + $0x270] sm:$0xff]  }
 0x3f3   :  { %2832 = vmatprep.subr.bf16.mxu0 %v3439_v0 }
 0x3f6   :  { %2833 = vmatpush3.bf16.msra.mxu0 %v3146_v52  ;;  %v3168_v52 = vld [vmem:[#allocation5 + $0x268] sm:$0xff]  }
 0x3f7   :  { %2834 = vmatprep.subr.bf16.mxu0 %v3439_v0 }
 0x3fa   :  { %2835 = vmatpush3.bf16.msra.mxu0 %v3147_v53  ;;  %v3169_v53 = vld [vmem:[#allocation5 + $0x260] sm:$0xff]  }
 0x3fb   :  { %2836 = vmatprep.subr.bf16.mxu0 %v3439_v0 }
 0x3fe   :  { %2837 = vmatpush3.bf16.msra.mxu0 %v3148_v54  ;;  %v3170_v54 = vld [vmem:[#allocation5 + $0x258] sm:$0xff]  }
 0x3ff   :  { %2838 = vmatprep.subr.bf16.mxu0 %v3439_v0 }
 0x402   :  { %2839 = vmatpush3.bf16.msra.mxu0 %v3149_v55  ;;  %v3171_v55 = vld [vmem:[#allocation5 + $0x250] sm:$0xff]  }
 0x403   :  { %2864 = vmatprep.subr.bf16.mxu0 %v3439_v0 }
 0x4a5   :  { %v638_v37 = vpop.f32.mrf.mxu0 }
 0x4a6   :  { %v639_v38 = vadd.f32 %v2398_v36, %v638_v37  ;;  %v3164_v36 = vld [vmem:[#allocation5 + $0x208] sm:$0xff]   ;;  %v3165_v37 = vld [vmem:[#allocation5 + $0x200] sm:$0xff]  }
 0x4a7   :  { %v2802_v39 = vpop.f32.mrf.mxu0 }
 0x4a8   :  { %v644_v40 = vsub.f32 0.0, %v639_v38  ;;  %v2425_v38 = vld [vmem:[#allocation7 + $0x7] ss:$0 sm:$0xff] }
 0x4a9   :  { %v641_v41 = vpop.f32.mrf.mxu0 }
 0x4aa   :  { %v645_v42 = vmul.f32 1.442695, %v644_v40 }
 0x4ab   :  { %v2803_v43 = vpop.f32.mrf.mxu0 }
 0x4ac   :  { %3262 = vpow2.f32 %v645_v42 }
 0x4b9   :  { %v3263_v44 = vpop.eup %3262 }
 0x4ba   :  { %v647_v45 = vadd.f32 1.0, %v3263_v44 }
 0x4bc   :  { %3264 = vrcp.f32 %v647_v45 }
 0x4c9   :  { %v3265_v46 = vpop.eup %3264 }
 0x4ca   :  { %v668_v47 = vpack.c.bf16 %v3265_v46, %v3265_v46 }
 0x4cc   :  { %2821 = vmatmul.mubr.bf16.vlgmr.msra.gmra.mxu1 %v668_v47 }
 0x4cd   :  { %2860 = vmatprep.mubr.msk.bf16.mxu1 %vm3440_vm0, %v3439_v0  ;;  %2845 = vmatpush3.bf16.msra.mxu1 %v3150_v10  ;;  %v3177_v10 = vld [vmem:[#allocation5 + $0x2a0] sm:$0xff]  }
 0x4ce   :  { %2846 = vmatprep.subr.bf16.mxu1 %v3439_v0 }
 0x4d1   :  { %2847 = vmatpush3.bf16.msra.mxu1 %v3151_v11  ;;  %v3178_v11 = vld [vmem:[#allocation5 + $0x298] sm:$0xff]  }
 0x4d2   :  { %2848 = vmatprep.subr.bf16.mxu1 %v3439_v0 }
 0x4d5   :  { %2849 = vmatpush3.bf16.msra.mxu1 %v3152_v12  ;;  %v3179_v12 = vld [vmem:[#allocation5 + $0x290] sm:$0xff]  }
 0x4d6   :  { %2850 = vmatprep.subr.bf16.mxu1 %v3439_v0 }
 0x4d9   :  { %2851 = vmatpush3.bf16.msra.mxu1 %v3153_v13  ;;  %v3180_v13 = vld [vmem:[#allocation5 + $0x288] sm:$0xff]  }
 0x4da   :  { %2852 = vmatprep.subr.bf16.mxu1 %v3439_v0 }
 0x4dd   :  { %2853 = vmatpush3.bf16.msra.mxu1 %v3154_v14  ;;  %v3181_v14 = vld [vmem:[#allocation5 + $0x280] sm:$0xff]  }
 0x4de   :  { %2854 = vmatprep.subr.bf16.mxu1 %v3439_v0 }
 0x4e1   :  { %2855 = vmatpush3.bf16.msra.mxu1 %v3155_v15  ;;  %v2443_v15 = vld [vmem:[#allocation7 + $0x9] ss:$0 sm:$0xff] }
 0x4e2   :  { %2856 = vmatprep.subr.bf16.mxu1 %v3439_v0 }
 0x4e5   :  { %2857 = vmatpush3.bf16.msra.mxu1 %v3156_v16 }
 0x4e6   :  { %2858 = vmatprep.subr.bf16.mxu1 %v3439_v0 }
 0x4e9   :  { %2859 = vmatpush3.bf16.msra.mxu1 %v3157_v17 }
 0x4ea   :  { %2884 = vmatprep.subr.bf16.mxu1 %v3439_v0 }
 0x58c   :  { %v757_v57 = vpop.f32.mrf.mxu1 }
 0x58d   :  { %v758_v58 = vadd.f32 %v2407_v56, %v757_v57  ;;  %v3172_v56 = vld [vmem:[#allocation5 + $0x248] sm:$0xff]   ;;  %v3173_v57 = vld [vmem:[#allocation5 + $0x240] sm:$0xff]  }
 0x58e   :  { %v2822_v59 = vpop.f32.mrf.mxu1 }
 0x58f   :  { %v763_v60 = vsub.f32 0.0, %v758_v58  ;;  %v2434_v58 = vld [vmem:[#allocation7 + $0x8] ss:$0 sm:$0xff] }
 0x590   :  { %v760_v61 = vpop.f32.mrf.mxu1 }
 0x591   :  { %v764_v62 = vmul.f32 1.442695, %v763_v60 }
 0x592   :  { %v2823_v63 = vpop.f32.mrf.mxu1 }
 0x593   :  { %3266 = vpow2.f32 %v764_v62 }
 0x5a0   :  { %v3267_v1 = vpop.eup %3266 }
 0x5a1   :  { %v766_v2 = vadd.f32 1.0, %v3267_v1 }
 0x5a3   :  { %3268 = vrcp.f32 %v766_v2 }
 0x5b0   :  { %v3269_v3 = vpop.eup %3268 }
 0x5b1   :  { %v768_v4 = vsub.f32 0.0, %v3269_v3 }
 0x5b3   :  { %v769_v5 = vmul.f32 1.442695, %v768_v4 }
 0x5b5   :  { %3270 = vpow2.f32 %v769_v5 }
 0x5c2   :  { %v3271_v6 = vpop.eup %3270 }
 0x5c3   :  { %v771_v7 = vadd.f32 1.0, %v3271_v6 }
 0x5c5   :  { %3272 = vrcp.f32 %v771_v7  ;;  %v3174_v7 = vld [vmem:[#allocation5 + $0x2b8] sm:$0xff]  }
 0x5d2   :  { %v3273_v8 = vpop.eup %3272 }
 0x5d3   :  { %v792_v9 = vpack.c.bf16 %v3273_v8, %v3273_v8  ;;  %v3175_v8 = vld [vmem:[#allocation5 + $0x2b0] sm:$0xff]  }
 0x5d5   :  { %2841 = vmatmul.mubr.bf16.vlgmr.msra.gmra.mxu0 %v792_v9  ;;  %v3176_v9 = vld [vmem:[#allocation5 + $0x2a8] sm:$0xff]  }
 0x5d6   :  { %2880 = vmatprep.mubr.msk.bf16.mxu0 %vm3440_vm0, %v3439_v0  ;;  %2865 = vmatpush3.bf16.msra.mxu0 %v3158_v30  ;;  %v3185_v30 = vld [vmem:[#allocation5 + $0x2e0] sm:$0xff]  }
 0x5d7   :  { %2866 = vmatprep.subr.bf16.mxu0 %v3439_v0 }
 0x5da   :  { %2867 = vmatpush3.bf16.msra.mxu0 %v3159_v31  ;;  %v3186_v31 = vld [vmem:[#allocation5 + $0x2d8] sm:$0xff]  }
 0x5db   :  { %2868 = vmatprep.subr.bf16.mxu0 %v3439_v0 }
 0x5de   :  { %2869 = vmatpush3.bf16.msra.mxu0 %v3160_v32  ;;  %v3187_v32 = vld [vmem:[#allocation5 + $0x2d0] sm:$0xff]  }
 0x5df   :  { %2870 = vmatprep.subr.bf16.mxu0 %v3439_v0 }
 0x5e2   :  { %2871 = vmatpush3.bf16.msra.mxu0 %v3161_v33  ;;  %v3188_v33 = vld [vmem:[#allocation5 + $0x2c8] sm:$0xff]  }
 0x5e3   :  { %2872 = vmatprep.subr.bf16.mxu0 %v3439_v0 }
 0x5e6   :  { %2873 = vmatpush3.bf16.msra.mxu0 %v3162_v34  ;;  %v3189_v34 = vld [vmem:[#allocation5 + $0x2c0] sm:$0xff]  }
 0x5e7   :  { %2874 = vmatprep.subr.bf16.mxu0 %v3439_v0 }
 0x5ea   :  { %2875 = vmatpush3.bf16.msra.mxu0 %v3163_v35  ;;  %v2452_v35 = vld [vmem:[#allocation7 + $0xa] ss:$0 sm:$0xff] }
 0x5eb   :  { %2876 = vmatprep.subr.bf16.mxu0 %v3439_v0 }
 0x5ee   :  { %2877 = vmatpush3.bf16.msra.mxu0 %v3164_v36 }
 0x5ef   :  { %2878 = vmatprep.subr.bf16.mxu0 %v3439_v0 }
 0x5f2   :  { %2879 = vmatpush3.bf16.msra.mxu0 %v3165_v37 }
 0x5f3   :  { %2904 = vmatprep.subr.bf16.mxu0 %v3439_v0 }
 0x695   :  { %v881_v19 = vpop.f32.mrf.mxu0 }
 0x696   :  { %v882_v20 = vadd.f32 %v2416_v18, %v881_v19 }
 0x697   :  { %v2842_v21 = vpop.f32.mrf.mxu0 }
 0x698   :  { %v887_v22 = vsub.f32 0.0, %v882_v20 }
 0x699   :  { %v884_v23 = vpop.f32.mrf.mxu0 }
 0x69a   :  { %v888_v24 = vmul.f32 1.442695, %v887_v22 }
 0x69b   :  { %v2843_v25 = vpop.f32.mrf.mxu0 }
 0x69c   :  { %3274 = vpow2.f32 %v888_v24 }
 0x6a9   :  { %v3275_v26 = vpop.eup %3274 }
 0x6aa   :  { %v890_v27 = vadd.f32 1.0, %v3275_v26 }
 0x6ac   :  { %3276 = vrcp.f32 %v890_v27  ;;  %v3182_v27 = vld [vmem:[#allocation5 + $0x2f8] sm:$0xff]  }
 0x6b9   :  { %v3277_v28 = vpop.eup %3276 }
 0x6ba   :  { %v911_v29 = vpack.c.bf16 %v3277_v28, %v3277_v28  ;;  %v3183_v28 = vld [vmem:[#allocation5 + $0x2f0] sm:$0xff]  }
 0x6bc   :  { %2861 = vmatmul.mubr.bf16.vlgmr.msra.gmra.mxu1 %v911_v29  ;;  %v3184_v29 = vld [vmem:[#allocation5 + $0x2e8] sm:$0xff]  }
 0x6bd   :  { %2900 = vmatprep.mubr.msk.bf16.mxu1 %vm3440_vm0, %v3439_v0  ;;  %2885 = vmatpush3.bf16.msra.mxu1 %v3166_v50  ;;  %v3193_v50 = vld [vmem:[#allocation5 + $0x320] sm:$0xff]  }
 0x6be   :  { %2886 = vmatprep.subr.bf16.mxu1 %v3439_v0 }
 0x6c1   :  { %2887 = vmatpush3.bf16.msra.mxu1 %v3167_v51  ;;  %v3194_v51 = vld [vmem:[#allocation5 + $0x318] sm:$0xff]  }
 0x6c2   :  { %2888 = vmatprep.subr.bf16.mxu1 %v3439_v0 }
 0x6c5   :  { %2889 = vmatpush3.bf16.msra.mxu1 %v3168_v52  ;;  %v2461_v52 = vld [vmem:[#allocation7 + $0xb] ss:$0 sm:$0xff] }
 0x6c6   :  { %2890 = vmatprep.subr.bf16.mxu1 %v3439_v0 }
 0x6c9   :  { %2891 = vmatpush3.bf16.msra.mxu1 %v3169_v53  ;;  %v3195_v53 = vld [vmem:[#allocation5 + $0x310] sm:$0xff]  }
 0x6ca   :  { %2892 = vmatprep.subr.bf16.mxu1 %v3439_v0 }
 0x6cd   :  { %2893 = vmatpush3.bf16.msra.mxu1 %v3170_v54 }
 0x6ce   :  { %2894 = vmatprep.subr.bf16.mxu1 %v3439_v0 }
 0x6d1   :  { %2895 = vmatpush3.bf16.msra.mxu1 %v3171_v55 }
 0x6d2   :  { %2896 = vmatprep.subr.bf16.mxu1 %v3439_v0 }
 0x6d5   :  { %2897 = vmatpush3.bf16.msra.mxu1 %v3172_v56 }
 0x6d6   :  { %2898 = vmatprep.subr.bf16.mxu1 %v3439_v0 }
 0x6d9   :  { %2899 = vmatpush3.bf16.msra.mxu1 %v3173_v57 }
 0x6da   :  { %2924 = vmatprep.subr.bf16.mxu1 %v3439_v0 }
 0x77c   :  { %v1000_v39 = vpop.f32.mrf.mxu1 }
 0x77d   :  { %v1001_v40 = vadd.f32 %v2425_v38, %v1000_v39 }
 0x77e   :  { %v2862_v41 = vpop.f32.mrf.mxu1 }
 0x77f   :  { %v1006_v42 = vsub.f32 0.0, %v1001_v40 }
 0x780   :  { %v1003_v43 = vpop.f32.mrf.mxu1 }
 0x781   :  { %v1007_v44 = vmul.f32 1.442695, %v1006_v42 }
 0x782   :  { %v2863_v45 = vpop.f32.mrf.mxu1 }
 0x783   :  { %3278 = vpow2.f32 %v1007_v44 }
 0x790   :  { %v3279_v46 = vpop.eup %3278 }
 0x791   :  { %v1009_v47 = vadd.f32 1.0, %v3279_v46 }
 0x793   :  { %3280 = vrcp.f32 %v1009_v47  ;;  %v3190_v47 = vld [vmem:[#allocation5 + $0x338] sm:$0xff]  }
 0x7a0   :  { %v3281_v48 = vpop.eup %3280 }
 0x7a1   :  { %v1030_v49 = vpack.c.bf16 %v3281_v48, %v3281_v48  ;;  %v3191_v48 = vld [vmem:[#allocation5 + $0x330] sm:$0xff]  }
 0x7a3   :  { %2881 = vmatmul.mubr.bf16.vlgmr.msra.gmra.mxu0 %v1030_v49  ;;  %v3192_v49 = vld [vmem:[#allocation5 + $0x328] sm:$0xff]  }
 0x7a4   :  { %2920 = vmatprep.mubr.msk.bf16.mxu0 %vm3440_vm0, %v3439_v0  ;;  %2905 = vmatpush3.bf16.msra.mxu0 %v3174_v7 }
 0x7a5   :  { %2906 = vmatprep.subr.bf16.mxu0 %v3439_v0 }
 0x7a8   :  { %2907 = vmatpush3.bf16.msra.mxu0 %v3175_v8 }
 0x7a9   :  { %2908 = vmatprep.subr.bf16.mxu0 %v3439_v0 }
 0x7ac   :  { %2909 = vmatpush3.bf16.msra.mxu0 %v3176_v9 }
 0x7ad   :  { %2910 = vmatprep.subr.bf16.mxu0 %v3439_v0 }
 0x7b0   :  { %2911 = vmatpush3.bf16.msra.mxu0 %v3177_v10 }
 0x7b1   :  { %2912 = vmatprep.subr.bf16.mxu0 %v3439_v0 }
 0x7b4   :  { %2913 = vmatpush3.bf16.msra.mxu0 %v3178_v11 }
 0x7b5   :  { %2914 = vmatprep.subr.bf16.mxu0 %v3439_v0 }
 0x7b8   :  { %2915 = vmatpush3.bf16.msra.mxu0 %v3179_v12 }
 0x7b9   :  { %2916 = vmatprep.subr.bf16.mxu0 %v3439_v0 }
 0x7bc   :  { %2917 = vmatpush3.bf16.msra.mxu0 %v3180_v13 }
 0x7bd   :  { %2918 = vmatprep.subr.bf16.mxu0 %v3439_v0 }
 0x7c0   :  { %2919 = vmatpush3.bf16.msra.mxu0 %v3181_v14 }
 0x7c1   :  { %2944 = vmatprep.subr.bf16.mxu0 %v3439_v0 }
 0x863   :  { %v1119_v59 = vpop.f32.mrf.mxu0 }
 0x864   :  { %v1120_v60 = vadd.f32 %v2434_v58, %v1119_v59  ;;  %v3196_v58 = vld [vmem:[#allocation5 + $0x308] sm:$0xff]  }
 0x865   :  { %v2882_v61 = vpop.f32.mrf.mxu0 }
 0x866   :  { %v1125_v62 = vsub.f32 0.0, %v1120_v60 }
 0x867   :  { %v1122_v63 = vpop.f32.mrf.mxu0 }
 0x868   :  { %v1126_v1 = vmul.f32 1.442695, %v1125_v62  ;;  %v3197_v62 = vld [vmem:[#allocation5 + $0x300] sm:$0xff]  }
 0x869   :  { %v2883_v2 = vpop.f32.mrf.mxu0 }
 0x86a   :  { %3282 = vpow2.f32 %v1126_v1 }
 0x877   :  { %v3283_v3 = vpop.eup %3282 }
 0x878   :  { %v1128_v4 = vadd.f32 1.0, %v3283_v3 }
 0x87a   :  { %3284 = vrcp.f32 %v1128_v4 }
 0x887   :  { %v3285_v5 = vpop.eup %3284 }
 0x888   :  { %v1149_v6 = vpack.c.bf16 %v3285_v5, %v3285_v5 }
 0x88a   :  { %2901 = vmatmul.mubr.bf16.vlgmr.msra.gmra.mxu1 %v1149_v6 }
 0x88b   :  { %2940 = vmatprep.mubr.msk.bf16.mxu1 %vm3440_vm0, %v3439_v0  ;;  %2925 = vmatpush3.bf16.msra.mxu1 %v3182_v27 }
 0x88c   :  { %2926 = vmatprep.subr.bf16.mxu1 %v3439_v0 }
 0x88f   :  { %2927 = vmatpush3.bf16.msra.mxu1 %v3183_v28 }
 0x890   :  { %2928 = vmatprep.subr.bf16.mxu1 %v3439_v0 }
 0x893   :  { %2929 = vmatpush3.bf16.msra.mxu1 %v3184_v29  ;;  %v3198_v29 = vld [vmem:[#allocation5 + $0x378] sm:$0xff]  }
 0x894   :  { %2930 = vmatprep.subr.bf16.mxu1 %v3439_v0 }
 0x897   :  { %2931 = vmatpush3.bf16.msra.mxu1 %v3185_v30  ;;  %v3199_v30 = vld [vmem:[#allocation5 + $0x370] sm:$0xff]  }
 0x898   :  { %2932 = vmatprep.subr.bf16.mxu1 %v3439_v0 }
 0x89b   :  { %2933 = vmatpush3.bf16.msra.mxu1 %v3186_v31  ;;  %v3200_v31 = vld [vmem:[#allocation5 + $0x368] sm:$0xff]  }
 0x89c   :  { %2934 = vmatprep.subr.bf16.mxu1 %v3439_v0 }
 0x89f   :  { %2935 = vmatpush3.bf16.msra.mxu1 %v3187_v32  ;;  %v3201_v32 = vld [vmem:[#allocation5 + $0x360] sm:$0xff]  }
 0x8a0   :  { %2936 = vmatprep.subr.bf16.mxu1 %v3439_v0 }
 0x8a3   :  { %2937 = vmatpush3.bf16.msra.mxu1 %v3188_v33  ;;  %v3202_v33 = vld [vmem:[#allocation5 + $0x358] sm:$0xff]  }
 0x8a4   :  { %2938 = vmatprep.subr.bf16.mxu1 %v3439_v0 }
 0x8a7   :  { %2939 = vmatpush3.bf16.msra.mxu1 %v3189_v34  ;;  %v3203_v34 = vld [vmem:[#allocation5 + $0x350] sm:$0xff]  }
 0x8a8   :  { %2964 = vmatprep.subr.bf16.mxu1 %v3439_v0 }
 0x94a   :  { %v1238_v16 = vpop.f32.mrf.mxu1 }
 0x94b   :  { %v1239_v17 = vadd.f32 %v2443_v15, %v1238_v16 }
 0x94c   :  { %v2902_v18 = vpop.f32.mrf.mxu1 }
 0x94d   :  { %v1244_v19 = vsub.f32 0.0, %v1239_v17 }
 0x94e   :  { %v1241_v20 = vpop.f32.mrf.mxu1 }
 0x94f   :  { %v1245_v21 = vmul.f32 1.442695, %v1244_v19 }
 0x950   :  { %v2903_v22 = vpop.f32.mrf.mxu1 }
 0x951   :  { %3286 = vpow2.f32 %v1245_v21 }
 0x95e   :  { %v3287_v23 = vpop.eup %3286 }
 0x95f   :  { %v1247_v24 = vadd.f32 1.0, %v3287_v23 }
 0x961   :  { %3288 = vrcp.f32 %v1247_v24 }
 0x96e   :  { %v3289_v25 = vpop.eup %3288 }
 0x96f   :  { %v1268_v26 = vpack.c.bf16 %v3289_v25, %v3289_v25 }
 0x971   :  { %2921 = vmatmul.mubr.bf16.vlgmr.msra.gmra.mxu0 %v1268_v26 }
 0x972   :  { %2960 = vmatprep.mubr.msk.bf16.mxu0 %vm3440_vm0, %v3439_v0  ;;  %2945 = vmatpush3.bf16.msra.mxu0 %v3190_v47 }
 0x973   :  { %2946 = vmatprep.subr.bf16.mxu0 %v3439_v0 }
 0x976   :  { %2947 = vmatpush3.bf16.msra.mxu0 %v3191_v48 }
 0x977   :  { %2948 = vmatprep.subr.bf16.mxu0 %v3439_v0 }
 0x97a   :  { %2949 = vmatpush3.bf16.msra.mxu0 %v3192_v49  ;;  %v3206_v49 = vld [vmem:[#allocation5 + $0x3b8] sm:$0xff]  }
 0x97b   :  { %2950 = vmatprep.subr.bf16.mxu0 %v3439_v0 }
 0x97e   :  { %2951 = vmatpush3.bf16.msra.mxu0 %v3193_v50  ;;  %v3207_v50 = vld [vmem:[#allocation5 + $0x3b0] sm:$0xff]  }
 0x97f   :  { %2952 = vmatprep.subr.bf16.mxu0 %v3439_v0 }
 0x982   :  { %2953 = vmatpush3.bf16.msra.mxu0 %v3194_v51  ;;  %v3208_v51 = vld [vmem:[#allocation5 + $0x3a8] sm:$0xff]  }
 0x983   :  { %2954 = vmatprep.subr.bf16.mxu0 %v3439_v0 }
 0x986   :  { %2955 = vmatpush3.bf16.msra.mxu0 %v3195_v53  ;;  %v3210_v53 = vld [vmem:[#allocation5 + $0x398] sm:$0xff]  }
 0x987   :  { %2956 = vmatprep.subr.bf16.mxu0 %v3439_v0 }
 0x98a   :  { %2957 = vmatpush3.bf16.msra.mxu0 %v3196_v58 }
 0x98b   :  { %2958 = vmatprep.subr.bf16.mxu0 %v3439_v0 }
 0x98e   :  { %2959 = vmatpush3.bf16.msra.mxu0 %v3197_v62 }
 0x98f   :  { %2984 = vmatprep.subr.bf16.mxu0 %v3439_v0 }
 0xa31   :  { %v1357_v36 = vpop.f32.mrf.mxu0 }
 0xa32   :  { %v1358_v37 = vadd.f32 %v2452_v35, %v1357_v36  ;;  %v3204_v35 = vld [vmem:[#allocation5 + $0x348] sm:$0xff]   ;;  %v3205_v36 = vld [vmem:[#allocation5 + $0x340] sm:$0xff]  }
 0xa33   :  { %v2922_v38 = vpop.f32.mrf.mxu0 }
 0xa34   :  { %v1363_v39 = vsub.f32 0.0, %v1358_v37  ;;  %v2470_v37 = vld [vmem:[#allocation7 + $0xc] ss:$0 sm:$0xff] }
 0xa35   :  { %v1360_v40 = vpop.f32.mrf.mxu0 }
 0xa36   :  { %v1364_v41 = vmul.f32 1.442695, %v1363_v39 }
 0xa37   :  { %v2923_v42 = vpop.f32.mrf.mxu0 }
 0xa38   :  { %3290 = vpow2.f32 %v1364_v41 }
 0xa45   :  { %v3291_v43 = vpop.eup %3290 }
 0xa46   :  { %v1366_v44 = vadd.f32 1.0, %v3291_v43 }
 0xa48   :  { %3292 = vrcp.f32 %v1366_v44 }
 0xa55   :  { %v3293_v45 = vpop.eup %3292 }
 0xa56   :  { %v1387_v46 = vpack.c.bf16 %v3293_v45, %v3293_v45 }
 0xa58   :  { %2941 = vmatmul.mubr.bf16.vlgmr.msra.gmra.mxu1 %v1387_v46 }
 0xa59   :  { %2980 = vmatprep.mubr.msk.bf16.mxu1 %vm3440_vm0, %v3439_v0  ;;  %2965 = vmatpush3.bf16.msra.mxu1 %v3198_v29  ;;  %v3225_v29 = vld [vmem:[#allocation5 + $0x420] sm:$0xff]  }
 0xa5a   :  { %2966 = vmatprep.subr.bf16.mxu1 %v3439_v0 }
 0xa5d   :  { %2967 = vmatpush3.bf16.msra.mxu1 %v3199_v30  ;;  %v3226_v30 = vld [vmem:[#allocation5 + $0x418] sm:$0xff]  }
 0xa5e   :  { %2968 = vmatprep.subr.bf16.mxu1 %v3439_v0 }
 0xa61   :  { %2969 = vmatpush3.bf16.msra.mxu1 %v3200_v31  ;;  %v3227_v31 = vld [vmem:[#allocation5 + $0x410] sm:$0xff]  }
 0xa62   :  { %2970 = vmatprep.subr.bf16.mxu1 %v3439_v0 }
 0xa65   :  { %2971 = vmatpush3.bf16.msra.mxu1 %v3201_v32  ;;  %v3228_v32 = vld [vmem:[#allocation5 + $0x408] sm:$0xff]  }
 0xa66   :  { %2972 = vmatprep.subr.bf16.mxu1 %v3439_v0 }
 0xa69   :  { %2973 = vmatpush3.bf16.msra.mxu1 %v3202_v33  ;;  %v3229_v33 = vld [vmem:[#allocation5 + $0x400] sm:$0xff]  }
 0xa6a   :  { %2974 = vmatprep.subr.bf16.mxu1 %v3439_v0 }
 0xa6d   :  { %2975 = vmatpush3.bf16.msra.mxu1 %v3203_v34  ;;  %v2497_v34 = vld [vmem:[#allocation7 + $0xf] ss:$0 sm:$0xff] }
 0xa6e   :  { %2976 = vmatprep.subr.bf16.mxu1 %v3439_v0 }
 0xa71   :  { %2977 = vmatpush3.bf16.msra.mxu1 %v3204_v35 }
 0xa72   :  { %2978 = vmatprep.subr.bf16.mxu1 %v3439_v0 }
 0xa75   :  { %2979 = vmatpush3.bf16.msra.mxu1 %v3205_v36 }
 0xa76   :  { %3004 = vmatprep.subr.bf16.mxu1 %v3439_v0 }
 0xb18   :  { %v1476_v54 = vpop.f32.mrf.mxu1 }
 0xb19   :  { %v1477_v55 = vadd.f32 %v2461_v52, %v1476_v54  ;;  %v3209_v52 = vld [vmem:[#allocation5 + $0x3a0] sm:$0xff]   ;;  %v3211_v54 = vld [vmem:[#allocation5 + $0x390] sm:$0xff]  }
 0xb1a   :  { %v2942_v56 = vpop.f32.mrf.mxu1 }
 0xb1b   :  { %v1482_v57 = vsub.f32 0.0, %v1477_v55  ;;  %v3212_v55 = vld [vmem:[#allocation5 + $0x388] sm:$0xff]   ;;  %v3213_v56 = vld [vmem:[#allocation5 + $0x380] sm:$0xff]  }
 0xb1c   :  { %v1479_v59 = vpop.f32.mrf.mxu1 }
 0xb1d   :  { %v1483_v60 = vmul.f32 1.442695, %v1482_v57  ;;  %v2479_v57 = vld [vmem:[#allocation7 + $0xd] ss:$0 sm:$0xff] }
 0xb1e   :  { %v2943_v61 = vpop.f32.mrf.mxu1 }
 0xb1f   :  { %3294 = vpow2.f32 %v1483_v60 }
 0xb2c   :  { %v3295_v63 = vpop.eup %3294 }
 0xb2d   :  { %v1485_v1 = vadd.f32 1.0, %v3295_v63 }
 0xb2f   :  { %3296 = vrcp.f32 %v1485_v1 }
 0xb3c   :  { %v3297_v2 = vpop.eup %3296 }
 0xb3d   :  { %v1487_v3 = vsub.f32 0.0, %v3297_v2 }
 0xb3f   :  { %v1488_v4 = vmul.f32 1.442695, %v1487_v3 }
 0xb41   :  { %3298 = vpow2.f32 %v1488_v4 }
 0xb4e   :  { %v3299_v5 = vpop.eup %3298 }
 0xb4f   :  { %v1490_v6 = vadd.f32 1.0, %v3299_v5 }
 0xb51   :  { %3300 = vrcp.f32 %v1490_v6  ;;  %v3214_v6 = vld [vmem:[#allocation5 + $0x3f8] sm:$0xff]  }
 0xb5e   :  { %v3301_v7 = vpop.eup %3300 }
 0xb5f   :  { %v1492_v8 = vsub.f32 0.0, %v3301_v7  ;;  %v3215_v7 = vld [vmem:[#allocation5 + $0x3f0] sm:$0xff]  }
 0xb61   :  { %v1493_v9 = vmul.f32 1.442695, %v1492_v8  ;;  %v3216_v8 = vld [vmem:[#allocation5 + $0x3e8] sm:$0xff]  }
 0xb63   :  { %3302 = vpow2.f32 %v1493_v9  ;;  %v3217_v9 = vld [vmem:[#allocation5 + $0x3e0] sm:$0xff]  }
 0xb70   :  { %v3303_v10 = vpop.eup %3302 }
 0xb71   :  { %v1495_v11 = vadd.f32 1.0, %v3303_v10  ;;  %v3218_v10 = vld [vmem:[#allocation5 + $0x3d8] sm:$0xff]  }
 0xb73   :  { %3304 = vrcp.f32 %v1495_v11  ;;  %v3219_v11 = vld [vmem:[#allocation5 + $0x3d0] sm:$0xff]  }
 0xb80   :  { %v3305_v12 = vpop.eup %3304 }
 0xb81   :  { %v1497_v13 = vsub.f32 0.0, %v3305_v12  ;;  %v3220_v12 = vld [vmem:[#allocation5 + $0x3c8] sm:$0xff]  }
 0xb83   :  { %v1498_v14 = vmul.f32 1.442695, %v1497_v13  ;;  %v3221_v13 = vld [vmem:[#allocation5 + $0x3c0] sm:$0xff]  }
 0xb85   :  { %3306 = vpow2.f32 %v1498_v14  ;;  %v2488_v14 = vld [vmem:[#allocation7 + $0xe] ss:$0 sm:$0xff] }
 0xb92   :  { %v3307_v15 = vpop.eup %3306 }
 0xb93   :  { %v1500_v16 = vadd.f32 1.0, %v3307_v15 }
 0xb95   :  { %3308 = vrcp.f32 %v1500_v16 }
 0xba2   :  { %v3309_v17 = vpop.eup %3308 }
 0xba3   :  { %v1502_v18 = vsub.f32 0.0, %v3309_v17 }
 0xba5   :  { %v1503_v19 = vmul.f32 1.442695, %v1502_v18 }
 0xba7   :  { %3310 = vpow2.f32 %v1503_v19 }
 0xbb4   :  { %v3311_v20 = vpop.eup %3310 }
 0xbb5   :  { %v1505_v21 = vadd.f32 1.0, %v3311_v20 }
 0xbb7   :  { %3312 = vrcp.f32 %v1505_v21 }
 0xbc4   :  { %v3313_v22 = vpop.eup %3312 }
 0xbc5   :  { %v1507_v23 = vsub.f32 0.0, %v3313_v22 }
 0xbc7   :  { %v1508_v24 = vmul.f32 1.442695, %v1507_v23 }
 0xbc9   :  { %3314 = vpow2.f32 %v1508_v24 }
 0xbd6   :  { %v3315_v25 = vpop.eup %3314 }
 0xbd7   :  { %v1510_v26 = vadd.f32 1.0, %v3315_v25 }
 0xbd9   :  { %3316 = vrcp.f32 %v1510_v26  ;;  %v3222_v26 = vld [vmem:[#allocation5 + $0x438] sm:$0xff]  }
 0xbe6   :  { %v3317_v27 = vpop.eup %3316 }
 0xbe7   :  { %v1531_v28 = vpack.c.bf16 %v3317_v27, %v3317_v27  ;;  %v3223_v27 = vld [vmem:[#allocation5 + $0x430] sm:$0xff]  }
 0xbe9   :  { %2961 = vmatmul.mubr.bf16.vlgmr.msra.gmra.mxu0 %v1531_v28  ;;  %v3224_v28 = vld [vmem:[#allocation5 + $0x428] sm:$0xff]  }
 0xbea   :  { %3000 = vmatprep.mubr.msk.bf16.mxu0 %vm3440_vm0, %v3439_v0  ;;  %2985 = vmatpush3.bf16.msra.mxu0 %v3206_v49  ;;  %v3233_v49 = vld [vmem:[#allocation5 + $0x460] sm:$0xff]  }
 0xbeb   :  { %2986 = vmatprep.subr.bf16.mxu0 %v3439_v0 }
 0xbee   :  { %2987 = vmatpush3.bf16.msra.mxu0 %v3207_v50  ;;  %v3234_v50 = vld [vmem:[#allocation5 + $0x458] sm:$0xff]  }
 0xbef   :  { %2988 = vmatprep.subr.bf16.mxu0 %v3439_v0 }
 0xbf2   :  { %2989 = vmatpush3.bf16.msra.mxu0 %v3208_v51  ;;  %v3235_v51 = vld [vmem:[#allocation5 + $0x450] sm:$0xff]  }
 0xbf3   :  { %2990 = vmatprep.subr.bf16.mxu0 %v3439_v0 }
 0xbf6   :  { %2991 = vmatpush3.bf16.msra.mxu0 %v3209_v52  ;;  %v3236_v52 = vld [vmem:[#allocation5 + $0x448] sm:$0xff]  }
 0xbf7   :  { %2992 = vmatprep.subr.bf16.mxu0 %v3439_v0 }
 0xbfa   :  { %2993 = vmatpush3.bf16.msra.mxu0 %v3210_v53  ;;  %v3237_v53 = vld [vmem:[#allocation5 + $0x440] sm:$0xff]  }
 0xbfb   :  { %2994 = vmatprep.subr.bf16.mxu0 %v3439_v0 }
 0xbfe   :  { %2995 = vmatpush3.bf16.msra.mxu0 %v3211_v54  ;;  %v2506_v54 = vld [vmem:[#allocation7 + $0x10] ss:$0 sm:$0xff] }
 0xbff   :  { %2996 = vmatprep.subr.bf16.mxu0 %v3439_v0 }
 0xc02   :  { %2997 = vmatpush3.bf16.msra.mxu0 %v3212_v55 }
 0xc03   :  { %2998 = vmatprep.subr.bf16.mxu0 %v3439_v0 }
 0xc06   :  { %2999 = vmatpush3.bf16.msra.mxu0 %v3213_v56 }
 0xc07   :  { %3024 = vmatprep.subr.bf16.mxu0 %v3439_v0 }
 0xca9   :  { %v1620_v38 = vpop.f32.mrf.mxu0 }
 0xcaa   :  { %v1621_v39 = vadd.f32 %v2470_v37, %v1620_v38 }
 0xcab   :  { %v2962_v40 = vpop.f32.mrf.mxu0 }
 0xcac   :  { %v1626_v41 = vsub.f32 0.0, %v1621_v39 }
 0xcad   :  { %v1623_v42 = vpop.f32.mrf.mxu0 }
 0xcae   :  { %v1627_v43 = vmul.f32 1.442695, %v1626_v41 }
 0xcaf   :  { %v2963_v44 = vpop.f32.mrf.mxu0 }
 0xcb0   :  { %3318 = vpow2.f32 %v1627_v43 }
 0xcbd   :  { %v3319_v45 = vpop.eup %3318 }
 0xcbe   :  { %v1629_v46 = vadd.f32 1.0, %v3319_v45 }
 0xcc0   :  { %3320 = vrcp.f32 %v1629_v46  ;;  %v3230_v46 = vld [vmem:[#allocation5 + $0x478] sm:$0xff]  }
 0xccd   :  { %v3321_v47 = vpop.eup %3320 }
 0xcce   :  { %v1650_v48 = vpack.c.bf16 %v3321_v47, %v3321_v47  ;;  %v3231_v47 = vld [vmem:[#allocation5 + $0x470] sm:$0xff]  }
 0xcd0   :  { %2981 = vmatmul.mubr.bf16.vlgmr.msra.gmra.mxu1 %v1650_v48  ;;  %v3232_v48 = vld [vmem:[#allocation5 + $0x468] sm:$0xff]  }
 0xcd1   :  { %3020 = vmatprep.mubr.msk.bf16.mxu1 %vm3440_vm0, %v3439_v0  ;;  %3005 = vmatpush3.bf16.msra.mxu1 %v3214_v6  ;;  %v3241_v6 = vld [vmem:[#allocation5 + $0x4a0] sm:$0xff]  }
 0xcd2   :  { %3006 = vmatprep.subr.bf16.mxu1 %v3439_v0 }
 0xcd5   :  { %3007 = vmatpush3.bf16.msra.mxu1 %v3215_v7  ;;  %v3242_v7 = vld [vmem:[#allocation5 + $0x498] sm:$0xff]  }
 0xcd6   :  { %3008 = vmatprep.subr.bf16.mxu1 %v3439_v0 }
 0xcd9   :  { %3009 = vmatpush3.bf16.msra.mxu1 %v3216_v8  ;;  %v3243_v8 = vld [vmem:[#allocation5 + $0x490] sm:$0xff]  }
 0xcda   :  { %3010 = vmatprep.subr.bf16.mxu1 %v3439_v0 }
 0xcdd   :  { %3011 = vmatpush3.bf16.msra.mxu1 %v3217_v9  ;;  %v3244_v9 = vld [vmem:[#allocation5 + $0x488] sm:$0xff]  }
 0xcde   :  { %3012 = vmatprep.subr.bf16.mxu1 %v3439_v0 }
 0xce1   :  { %3013 = vmatpush3.bf16.msra.mxu1 %v3218_v10  ;;  %v3245_v10 = vld [vmem:[#allocation5 + $0x480] sm:$0xff]  }
 0xce2   :  { %3014 = vmatprep.subr.bf16.mxu1 %v3439_v0 }
 0xce5   :  { %3015 = vmatpush3.bf16.msra.mxu1 %v3219_v11  ;;  %v2515_v11 = vld [vmem:[#allocation7 + $0x11] ss:$0 sm:$0xff] }
 0xce6   :  { %3016 = vmatprep.subr.bf16.mxu1 %v3439_v0 }
 0xce9   :  { %3017 = vmatpush3.bf16.msra.mxu1 %v3220_v12 }
 0xcea   :  { %3018 = vmatprep.subr.bf16.mxu1 %v3439_v0 }
 0xced   :  { %3019 = vmatpush3.bf16.msra.mxu1 %v3221_v13 }
 0xcee   :  { %3044 = vmatprep.subr.bf16.mxu1 %v3439_v0 }
 0xd90   :  { %v1739_v58 = vpop.f32.mrf.mxu1 }
 0xd91   :  { %v1740_v59 = vadd.f32 %v2479_v57, %v1739_v58 }
 0xd92   :  { %v2982_v60 = vpop.f32.mrf.mxu1 }
 0xd93   :  { %v1745_v61 = vsub.f32 0.0, %v1740_v59 }
 0xd94   :  { %v1742_v62 = vpop.f32.mrf.mxu1 }
 0xd95   :  { %v1746_v63 = vmul.f32 1.442695, %v1745_v61 }
 0xd96   :  { %v2983_v1 = vpop.f32.mrf.mxu1 }
 0xd97   :  { %3322 = vpow2.f32 %v1746_v63 }
 0xda4   :  { %v3323_v2 = vpop.eup %3322 }
 0xda5   :  { %v1748_v3 = vadd.f32 1.0, %v3323_v2 }
 0xda7   :  { %3324 = vrcp.f32 %v1748_v3  ;;  %v3238_v3 = vld [vmem:[#allocation5 + $0x4b8] sm:$0xff]  }
 0xdb4   :  { %v3325_v4 = vpop.eup %3324 }
 0xdb5   :  { %v1769_v5 = vpack.c.bf16 %v3325_v4, %v3325_v4  ;;  %v3239_v4 = vld [vmem:[#allocation5 + $0x4b0] sm:$0xff]  }
 0xdb7   :  { %3001 = vmatmul.mubr.bf16.vlgmr.msra.gmra.mxu0 %v1769_v5  ;;  %v3240_v5 = vld [vmem:[#allocation5 + $0x4a8] sm:$0xff]  }
 0xdb8   :  { %3040 = vmatprep.mubr.msk.bf16.mxu0 %vm3440_vm0, %v3439_v0  ;;  %3025 = vmatpush3.bf16.msra.mxu0 %v3222_v26 }
 0xdb9   :  { %3026 = vmatprep.subr.bf16.mxu0 %v3439_v0 }
 0xdbc   :  { %3027 = vmatpush3.bf16.msra.mxu0 %v3223_v27 }
 0xdbd   :  { %3028 = vmatprep.subr.bf16.mxu0 %v3439_v0 }
 0xdc0   :  { %3029 = vmatpush3.bf16.msra.mxu0 %v3224_v28 }
 0xdc1   :  { %3030 = vmatprep.subr.bf16.mxu0 %v3439_v0 }
 0xdc4   :  { %3031 = vmatpush3.bf16.msra.mxu0 %v3225_v29 }
 0xdc5   :  { %3032 = vmatprep.subr.bf16.mxu0 %v3439_v0 }
 0xdc8   :  { %3033 = vmatpush3.bf16.msra.mxu0 %v3226_v30 }
 0xdc9   :  { %3034 = vmatprep.subr.bf16.mxu0 %v3439_v0 }
 0xdcc   :  { %3035 = vmatpush3.bf16.msra.mxu0 %v3227_v31 }
 0xdcd   :  { %3036 = vmatprep.subr.bf16.mxu0 %v3439_v0 }
 0xdd0   :  { %3037 = vmatpush3.bf16.msra.mxu0 %v3228_v32 }
 0xdd1   :  { %3038 = vmatprep.subr.bf16.mxu0 %v3439_v0 }
 0xdd4   :  { %3039 = vmatpush3.bf16.msra.mxu0 %v3229_v33 }
 0xdd5   :  { %3064 = vmatprep.subr.bf16.mxu0 %v3439_v0 }
 0xe77   :  { %v1858_v15 = vpop.f32.mrf.mxu0 }
 0xe78   :  { %v1859_v16 = vadd.f32 %v2488_v14, %v1858_v15 }
 0xe79   :  { %v3002_v17 = vpop.f32.mrf.mxu0 }
 0xe7a   :  { %v1864_v18 = vsub.f32 0.0, %v1859_v16 }
 0xe7b   :  { %v1861_v19 = vpop.f32.mrf.mxu0 }
 0xe7c   :  { %v1865_v20 = vmul.f32 1.442695, %v1864_v18 }
 0xe7d   :  { %v3003_v21 = vpop.f32.mrf.mxu0 }
 0xe7e   :  { %3326 = vpow2.f32 %v1865_v20 }
 0xe8b   :  { %v3327_v22 = vpop.eup %3326 }
 0xe8c   :  { %v1867_v23 = vadd.f32 1.0, %v3327_v22 }
 0xe8e   :  { %3328 = vrcp.f32 %v1867_v23  ;;  %v2524_v23 = vld [vmem:[#allocation7 + $0x12] ss:$0 sm:$0xff] }
 0xe9b   :  { %v3329_v24 = vpop.eup %3328 }
 0xe9c   :  { %v1888_v25 = vpack.c.bf16 %v3329_v24, %v3329_v24 }
 0xe9e   :  { %3021 = vmatmul.mubr.bf16.vlgmr.msra.gmra.mxu1 %v1888_v25 }
 0xe9f   :  { %3060 = vmatprep.mubr.msk.bf16.mxu1 %vm3440_vm0, %v3439_v0  ;;  %3045 = vmatpush3.bf16.msra.mxu1 %v3230_v46 }
 0xea0   :  { %3046 = vmatprep.subr.bf16.mxu1 %v3439_v0 }
 0xea3   :  { %3047 = vmatpush3.bf16.msra.mxu1 %v3231_v47 }
 0xea4   :  { %3048 = vmatprep.subr.bf16.mxu1 %v3439_v0 }
 0xea7   :  { %3049 = vmatpush3.bf16.msra.mxu1 %v3232_v48 }
 0xea8   :  { %3050 = vmatprep.subr.bf16.mxu1 %v3439_v0 }
 0xeab   :  { %3051 = vmatpush3.bf16.msra.mxu1 %v3233_v49 }
 0xeac   :  { %3052 = vmatprep.subr.bf16.mxu1 %v3439_v0 }
 0xeaf   :  { %3053 = vmatpush3.bf16.msra.mxu1 %v3234_v50 }
 0xeb0   :  { %3054 = vmatprep.subr.bf16.mxu1 %v3439_v0 }
 0xeb3   :  { %3055 = vmatpush3.bf16.msra.mxu1 %v3235_v51 }
 0xeb4   :  { %3056 = vmatprep.subr.bf16.mxu1 %v3439_v0 }
 0xeb7   :  { %3057 = vmatpush3.bf16.msra.mxu1 %v3236_v52 }
 0xeb8   :  { %3058 = vmatprep.subr.bf16.mxu1 %v3439_v0 }
 0xebb   :  { %3059 = vmatpush3.bf16.msra.mxu1 %v3237_v53 }
 0xf5e   :  { %v1977_v35 = vpop.f32.mrf.mxu1 }
 0xf5f   :  { %v1978_v36 = vadd.f32 %v2497_v34, %v1977_v35 }
 0xf60   :  { %v3022_v37 = vpop.f32.mrf.mxu1 }
 0xf61   :  { %v1983_v38 = vsub.f32 0.0, %v1978_v36 }
 0xf62   :  { %v1980_v39 = vpop.f32.mrf.mxu1 }
 0xf63   :  { %v1984_v40 = vmul.f32 1.442695, %v1983_v38 }
 0xf64   :  { %v3023_v41 = vpop.f32.mrf.mxu1 }
 0xf65   :  { %3330 = vpow2.f32 %v1984_v40 }
 0xf72   :  { %v3331_v42 = vpop.eup %3330 }
 0xf73   :  { %v1986_v43 = vadd.f32 1.0, %v3331_v42 }
 0xf75   :  { %3332 = vrcp.f32 %v1986_v43 }
 0xf82   :  { %v3333_v44 = vpop.eup %3332 }
 0xf83   :  { %v2007_v45 = vpack.c.bf16 %v3333_v44, %v3333_v44 }
 0xf85   :  { %3041 = vmatmul.mubr.bf16.vlgmr.msra.gmra.mxu0 %v2007_v45 }
 0xf86   :  { %3080 = vmatprep.mubr.msk.bf16.mxu0 %vm3440_vm0, %v3439_v0  ;;  %3065 = vmatpush3.bf16.msra.mxu0 %v3238_v3 }
 0xf87   :  { %3066 = vmatprep.subr.bf16.mxu0 %v3439_v0 }
 0xf8a   :  { %3067 = vmatpush3.bf16.msra.mxu0 %v3239_v4 }
 0xf8b   :  { %3068 = vmatprep.subr.bf16.mxu0 %v3439_v0 }
 0xf8e   :  { %3069 = vmatpush3.bf16.msra.mxu0 %v3240_v5 }
 0xf8f   :  { %3070 = vmatprep.subr.bf16.mxu0 %v3439_v0 }
 0xf92   :  { %3071 = vmatpush3.bf16.msra.mxu0 %v3241_v6 }
 0xf93   :  { %3072 = vmatprep.subr.bf16.mxu0 %v3439_v0 }
 0xf96   :  { %3073 = vmatpush3.bf16.msra.mxu0 %v3242_v7 }
 0xf97   :  { %3074 = vmatprep.subr.bf16.mxu0 %v3439_v0 }
 0xf9a   :  { %3075 = vmatpush3.bf16.msra.mxu0 %v3243_v8 }
 0xf9b   :  { %3076 = vmatprep.subr.bf16.mxu0 %v3439_v0 }
 0xf9e   :  { %3077 = vmatpush3.bf16.msra.mxu0 %v3244_v9 }
 0xf9f   :  { %3078 = vmatprep.subr.bf16.mxu0 %v3439_v0 }
 0xfa2   :  { %3079 = vmatpush3.bf16.msra.mxu0 %v3245_v10 }
0x1045   :  { %v2096_v55 = vpop.f32.mrf.mxu0 }
0x1046   :  { %v2097_v56 = vadd.f32 %v2506_v54, %v2096_v55 }
0x1047   :  { %v3042_v57 = vpop.f32.mrf.mxu0 }
0x1048   :  { %v2102_v58 = vsub.f32 0.0, %v2097_v56 }
0x1049   :  { %v2099_v59 = vpop.f32.mrf.mxu0 }
0x104a   :  { %v2103_v60 = vmul.f32 1.442695, %v2102_v58 }
0x104b   :  { %v3043_v61 = vpop.f32.mrf.mxu0 }
0x104c   :  { %3334 = vpow2.f32 %v2103_v60 }
0x1059   :  { %v3335_v62 = vpop.eup %3334 }
0x105a   :  { %v2105_v63 = vadd.f32 1.0, %v3335_v62 }
0x105c   :  { %3336 = vrcp.f32 %v2105_v63 }
0x1069   :  { %v3337_v1 = vpop.eup %3336 }
0x106a   :  { %v2126_v2 = vpack.c.bf16 %v3337_v1, %v3337_v1 }
0x106c   :  { %3061 = vmatmul.mubr.bf16.vlgmr.msra.gmra.mxu1 %v2126_v2 }
0x112c   :  { %v2215_v12 = vpop.f32.mrf.mxu1 }
0x112d   :  { %v2216_v13 = vadd.f32 %v2515_v11, %v2215_v12 }
0x112e   :  { %v3062_v14 = vpop.f32.mrf.mxu1 }
0x112f   :  { %v2221_v15 = vsub.f32 0.0, %v2216_v13 }
0x1130   :  { %v2218_v16 = vpop.f32.mrf.mxu1 }
0x1131   :  { %v2222_v17 = vmul.f32 1.442695, %v2221_v15 }
0x1132   :  { %v3063_v18 = vpop.f32.mrf.mxu1 }
0x1133   :  { %3338 = vpow2.f32 %v2222_v17 }
0x1140   :  { %v3339_v19 = vpop.eup %3338 }
0x1141   :  { %v2224_v20 = vadd.f32 1.0, %v3339_v19 }
0x1143   :  { %3340 = vrcp.f32 %v2224_v20 }
0x1150   :  { %v3341_v21 = vpop.eup %3340 }
0x1151   :  { %v2245_v22 = vpack.c.bf16 %v3341_v21, %v3341_v21 }
0x1153   :  { %3081 = vmatmul.mubr.bf16.vlgmr.msra.gmra.mxu0 %v2245_v22 }
0x1213   :  { %v2334_v24 = vpop.f32.mrf.mxu0 }
0x1214   :  { %v2335_v25 = vadd.f32 %v2524_v23, %v2334_v24 }
0x1215   :  { %v3082_v0 = vpop.f32.mrf.mxu0 }
0x1216   :  { %v2340_v26 = vsub.f32 0.0, %v2335_v25 }
0x1217   :  { %v2337_v27 = vpop.f32.mrf.mxu0 }
0x1218   :  { %v2341_v28 = vmul.f32 1.442695, %v2340_v26 }
0x1219   :  { %v3083_v29 = vpop.f32.mrf.mxu0 }
0x121a   :  { %3342 = vpow2.f32 %v2341_v28 }
0x1227   :  { %v3343_v30 = vpop.eup %3342 }
0x1228   :  { %v2343_v31 = vadd.f32 1.0, %v3343_v30 }
0x122a   :  { %3344 = vrcp.f32 %v2343_v31 }
0x1237   :  { %v3345_v32 = vpop.eup %3344 }
0x1238   :  { %2345 = vst [vmem:[#allocation8] sm:$0xff] %v3345_v32 }
0x1239   :  { %3417 = shalt.err (!%p3414_p5)
}
0x123a   :  { %2355 = dma.vmem_to_hbm [thread:$0]  %s2353_s2, 128, %s3667_s3, [#allocation4]  }
0x123b   :  { %3430 = dma.done.wait [#allocation4], 128  }
0x123c   :  { %3431 = vsyncadd [#allocation4], 4294967168 }
0x123d   :  { %2359 = vsyncpa [#allocation3], 1 }
0x123e   :  { %2360 = vsyncpa [#allocation6], 1 }
0x123f   :  { %2361 = vsyncpa [#allocation4], 1 }

</bundles_post_ra>
